<compile_context>
chip_gen: v7x
topology: tpu7x:2x2x1
jax: 0.10.0
libtpu: 0.0.40
codegen_flags: <defaults>
</compile_context>

<pallas_src>
import jax
import jax.numpy as jnp
from jax.experimental import pallas as pl
from jax.experimental.pallas import tpu as pltpu


# ---------------------------------------------------------------------------
# In-kernel helpers
# ---------------------------------------------------------------------------
def _shift_cat(x):
    """x: (L, C) -> (L, 3C) = [x[l-1], x[l], x[l+1]] with zero padding at edges."""
    L = x.shape[0]
    pos = jax.lax.broadcasted_iota(jnp.int32, x.shape, 0)
    down = pltpu.roll(x, shift=1, axis=0)          # down[l] = x[l-1]   (wraps at l=0)
    down = jnp.where(pos == 0, 0.0, down)          # zero the wrapped row
    up = pltpu.roll(x, shift=L - 1, axis=0)        # up[l]   = x[l+1]   (wraps at l=L-1)
    up = jnp.where(pos == L - 1, 0.0, up)
    return jnp.concatenate([down, x, up], axis=1)


def _block_fwd(x, w1_ref, b1_ref, w2_ref, b2_ref, wsc_ref, bsc_ref, y_scr):
    """One DownBlock: Block(conv-bn-relu, conv-bn, 1x1-shortcut-bn, +, relu) + MaxPool(2,2).

    x:     (L, Cin)  f32 activation (in VMEM / registers)
    w1:    (3*Cin, Cmid)  BN1-scale already folded in;  b1: (1, Cmid)
    w2:    (3*Cmid, Cout) BN2-scale folded;             b2: (1, Cout)
    wsc:   (Cin, Cout)    BNsc-scale folded;            bsc:(1, Cout)
    y_scr: (L, Cout) VMEM scratch for the pre-pool activation.
    returns (L//2, Cout)
    """
    h = jnp.dot(_shift_cat(x), w1_ref[...], preferred_element_type=jnp.float32)
    h = jnp.maximum(h + b1_ref[...], 0.0)                     # bn1 bias + relu1

    h = jnp.dot(_shift_cat(h), w2_ref[...], preferred_element_type=jnp.float32)
    h = h + b2_ref[...]                                       # bn2 bias

    sc = jnp.dot(x, wsc_ref[...], preferred_element_type=jnp.float32)
    sc = sc + bsc_ref[...]                                    # shortcut 1x1 conv + bn

    y = jnp.maximum(h + sc, 0.0)                              # residual add + relu2

    # MaxPool1d(kernel=2, stride=2) along L via stride-2 VMEM reads (no sublane
    # splitting reshape).
    y_scr[...] = y
    Lh = y.shape[0] // 2
    even = y_scr[pl.ds(0, Lh, stride=2), :]
    odd = y_scr[pl.ds(1, Lh, stride=2), :]
    return jnp.maximum(even, odd)


def _make_kernel(n_blocks):
    def kernel(*refs):
        x_ref = refs[0]
        wrefs = refs[1:1 + 6 * n_blocks]
        wfc_ref = refs[1 + 6 * n_blocks]
        bfc_ref = refs[2 + 6 * n_blocks]
        out_ref = refs[3 + 6 * n_blocks]
        scr = refs[4 + 6 * n_blocks:]

        h = x_ref[...]                                        # (L0, Cin)
        for i in range(n_blocks):
            w1, b1, w2, b2, wsc, bsc = wrefs[6 * i:6 * i + 6]
            h = _block_fwd(h, w1, b1, w2, b2, wsc, bsc, scr[i])

        # FinalBlock (pretrain=True): AdaptiveAvgPool1d(1) -> Flatten -> Dropout(id) -> Linear
        m = jnp.mean(h, axis=0, keepdims=True)                # (1, C_last)
        out_ref[...] = (jnp.dot(m, wfc_ref[...], preferred_element_type=jnp.float32)
                        + bfc_ref[...])
    return kernel


# ---------------------------------------------------------------------------
# Fused forward (single pallas_call)
# ---------------------------------------------------------------------------
def model_forward(x_ncl, params):
    """x_ncl: (B, C_in, L) like PyTorch NCL.  Returns (B, num_classes)."""
    B = x_ncl.shape[0]
    # NCL -> NLC; tiny transpose, fused into the same XLA executable under jit.
    x = jnp.transpose(x_ncl, (0, 2, 1)).astype(jnp.float32)   # (B, L, Cin)
    L0, cin = x.shape[1], x.shape[2]
    ncls = params["wfc"].shape[1]

    blocks = params["blocks"]
    n_blocks = len(blocks)

    weights = []
    for p in blocks:
        weights += [p["w1"], p["b1"], p["w2"], p["b2"], p["wsc"], p["bsc"]]
    weights += [params["wfc"], params["bfc"]]

    def full_spec(a):
        nd = a.ndim
        return pl.BlockSpec(a.shape, lambda b, _nd=nd: (0,) * _nd)

    in_specs = [pl.BlockSpec((None, L0, cin), lambda b: (b, 0, 0))]
    in_specs += [full_spec(w) for w in weights]

    # One VMEM scratch per block for the pre-pool activation (strided-read pooling).
    scratch_shapes = []
    L = L0
    for p in blocks:
        cout = p["w2"].shape[1]
        scratch_shapes.append(pltpu.VMEM((L, cout), jnp.float32))
        L //= 2

    out = pl.pallas_call(
        _make_kernel(n_blocks),
        out_shape=jax.ShapeDtypeStruct((B, 1, ncls), jnp.float32),
        grid=(B,),
        in_specs=in_specs,
        out_specs=pl.BlockSpec((None, 1, ncls), lambda b: (b, 0, 0)),
        scratch_shapes=scratch_shapes,
        compiler_params=pltpu.CompilerParams(dimension_semantics=("parallel",)),
    )(x, *weights)
    return out.reshape(B, ncls)


# ---------------------------------------------------------------------------
# Host-side parameter construction (shapes follow the PyTorch __init__);
# BN (eval, fresh running stats mean=0 / var=1) scale folded into conv weights.
# ---------------------------------------------------------------------------
def _bn_scale_bias(gamma, beta, eps=1e-5):
    scale = gamma / jnp.sqrt(1.0 + eps)   # running var = 1
    bias = beta                           # running mean = 0
    return scale, bias


def init_block_params(key, cin, cout):
    cmid = cout // 2
    ks = jax.random.split(key, 9)
    # PyTorch Conv1d weight layout: (out, in, k)
    w1 = jax.random.normal(ks[0], (cmid, cin, 3), jnp.float32) * 0.2
    w2 = jax.random.normal(ks[1], (cout, cmid, 3), jnp.float32) * 0.2
    wsc = jax.random.normal(ks[2], (cout, cin, 1), jnp.float32) * 0.2
    g1 = 1.0 + 0.1 * jax.random.normal(ks[3], (cmid,), jnp.float32)
    be1 = 0.1 * jax.random.normal(ks[4], (cmid,), jnp.float32)
    g2 = 1.0 + 0.1 * jax.random.normal(ks[5], (cout,), jnp.float32)
    be2 = 0.1 * jax.random.normal(ks[6], (cout,), jnp.float32)
    gs = 1.0 + 0.1 * jax.random.normal(ks[7], (cout,), jnp.float32)
    bes = 0.1 * jax.random.normal(ks[8], (cout,), jnp.float32)

    s1, b1 = _bn_scale_bias(g1, be1)
    s2, b2 = _bn_scale_bias(g2, be2)
    ssc, bsc = _bn_scale_bias(gs, bes)

    # (out,in,k) -> (k,in,out) -> (3*in, out), BN scale folded per out-channel.
    w1f = jnp.transpose(w1, (2, 1, 0)).reshape(3 * cin, cmid) * s1[None, :]
    w2f = jnp.transpose(w2, (2, 1, 0)).reshape(3 * cmid, cout) * s2[None, :]
    wscf = jnp.transpose(wsc[:, :, 0], (1, 0)) * ssc[None, :]

    return {"w1": w1f, "b1": b1.reshape(1, -1),
            "w2": w2f, "b2": b2.reshape(1, -1),
            "wsc": wscf, "bsc": bsc.reshape(1, -1)}


# ---------------------------------------------------------------------------
# Pure-JAX reference (same folded weights) for a numeric sanity check
# ---------------------------------------------------------------------------
def _reference_forward(x_ncl, params):
    h = jnp.transpose(x_ncl, (0, 2, 1)).astype(jnp.float32)   # (B, L, C)

    def cat(z):
        zm = jnp.pad(z, ((0, 0), (1, 0), (0, 0)))[:, :-1, :]  # z[l-1]
        zp = jnp.pad(z, ((0, 0), (0, 1), (0, 0)))[:, 1:, :]   # z[l+1]
        return jnp.concatenate([zm, z, zp], axis=-1)

    for p in params["blocks"]:
        a = jnp.maximum(cat(h) @ p["w1"] + p["b1"], 0.0)
        c = cat(a) @ p["w2"] + p["b2"]
        sc = h @ p["wsc"] + p["bsc"]
        y = jnp.maximum(c + sc, 0.0)
        B, L, C = y.shape
        h = jnp.max(y.reshape(B, L // 2, 2, C), axis=2)
    m = jnp.mean(h, axis=1)
    return m @ params["wfc"] + params["bfc"]


# ---------------------------------------------------------------------------
if __name__ == "__main__":
    key = jax.random.PRNGKey(0)
    B, C_in, L = 2, 2, 64          # input (batch, channels=2, seq=64)
    num_classes = 10               # args.num_classes; args.pretrain = True
    filters = [8, 16, 32, 64]      # n=8 -> [n, 2n, 4n, 8n]

    k_x, k_p = jax.random.split(key)
    x = jax.random.normal(k_x, (B, C_in, L), jnp.float32)

    keys = jax.random.split(k_p, len(filters) + 1)
    blocks = []
    cin = C_in
    for i, cout in enumerate(filters):
        blocks.append(init_block_params(keys[i], cin, cout))
        cin = cout

    kw, kb = jax.random.split(keys[-1])
    w_fc = jax.random.normal(kw, (num_classes, filters[-1]), jnp.float32) * 0.1  # (out, in)
    b_fc = jax.random.normal(kb, (num_classes,), jnp.float32) * 0.1

    params = {"blocks": blocks,
              "wfc": jnp.transpose(w_fc),       # (C_last, num_classes)
              "bfc": b_fc.reshape(1, -1)}       # (1, num_classes)

    fwd = jax.jit(model_forward)
    out = jax.block_until_ready(fwd(x, params))

    assert out.shape == (B, num_classes)
    assert bool(jnp.all(jnp.isfinite(out)))

    ref = jax.block_until_ready(_reference_forward(x, params))
    assert bool(jnp.allclose(out, ref, rtol=1e-3, atol=1e-3)), (
        f"mismatch vs reference: max abs err {float(jnp.max(jnp.abs(out - ref)))}")

    print("KERNEL_OK")
</pallas_src>

<mosaic_0001>
module attributes {stable_mosaic.version = 11 : i64} {
  func.func @kernel(%arg0: i32, %arg1: memref<1x64x2xf32, #tpu.memory_space<vmem>>, %arg2: memref<6x4xf32, #tpu.memory_space<vmem>>, %arg3: memref<1x4xf32, #tpu.memory_space<vmem>>, %arg4: memref<12x8xf32, #tpu.memory_space<vmem>>, %arg5: memref<1x8xf32, #tpu.memory_space<vmem>>, %arg6: memref<2x8xf32, #tpu.memory_space<vmem>>, %arg7: memref<1x8xf32, #tpu.memory_space<vmem>>, %arg8: memref<24x8xf32, #tpu.memory_space<vmem>>, %arg9: memref<1x8xf32, #tpu.memory_space<vmem>>, %arg10: memref<24x16xf32, #tpu.memory_space<vmem>>, %arg11: memref<1x16xf32, #tpu.memory_space<vmem>>, %arg12: memref<8x16xf32, #tpu.memory_space<vmem>>, %arg13: memref<1x16xf32, #tpu.memory_space<vmem>>, %arg14: memref<48x16xf32, #tpu.memory_space<vmem>>, %arg15: memref<1x16xf32, #tpu.memory_space<vmem>>, %arg16: memref<48x32xf32, #tpu.memory_space<vmem>>, %arg17: memref<1x32xf32, #tpu.memory_space<vmem>>, %arg18: memref<16x32xf32, #tpu.memory_space<vmem>>, %arg19: memref<1x32xf32, #tpu.memory_space<vmem>>, %arg20: memref<96x32xf32, #tpu.memory_space<vmem>>, %arg21: memref<1x32xf32, #tpu.memory_space<vmem>>, %arg22: memref<96x64xf32, #tpu.memory_space<vmem>>, %arg23: memref<1x64xf32, #tpu.memory_space<vmem>>, %arg24: memref<32x64xf32, #tpu.memory_space<vmem>>, %arg25: memref<1x64xf32, #tpu.memory_space<vmem>>, %arg26: memref<64x10xf32, #tpu.memory_space<vmem>>, %arg27: memref<1x10xf32, #tpu.memory_space<vmem>>, %arg28: memref<1x1x10xf32, #tpu.memory_space<vmem>>, %arg29: memref<64x8xf32, #tpu.memory_space<vmem>>, %arg30: memref<32x16xf32, #tpu.memory_space<vmem>>, %arg31: memref<16x32xf32, #tpu.memory_space<vmem>>, %arg32: memref<8x64xf32, #tpu.memory_space<vmem>>) attributes {dimension_semantics = [#tpu.dimension_semantics<parallel>], iteration_bounds = array<i64: 2>, scalar_prefetch = 0 : i64, scratch_operands = 4 : i64, tpu.core_type = #tpu.core_type<tc>, window_params = [{transform_indices = @transform_0, window_bounds = array<i64: 1, 64, 2>}, {pipeline_mode = #tpu.pipeline_mode<synchronous>, transform_indices = @transform_1, window_bounds = array<i64: 6, 4>}, {pipeline_mode = #tpu.pipeline_mode<synchronous>, transform_indices = @transform_2, window_bounds = array<i64: 1, 4>}, {pipeline_mode = #tpu.pipeline_mode<synchronous>, transform_indices = @transform_3, window_bounds = array<i64: 12, 8>}, {pipeline_mode = #tpu.pipeline_mode<synchronous>, transform_indices = @transform_4, window_bounds = array<i64: 1, 8>}, {pipeline_mode = #tpu.pipeline_mode<synchronous>, transform_indices = @transform_5, window_bounds = array<i64: 2, 8>}, {pipeline_mode = #tpu.pipeline_mode<synchronous>, transform_indices = @transform_6, window_bounds = array<i64: 1, 8>}, {pipeline_mode = #tpu.pipeline_mode<synchronous>, transform_indices = @transform_7, window_bounds = array<i64: 24, 8>}, {pipeline_mode = #tpu.pipeline_mode<synchronous>, transform_indices = @transform_8, window_bounds = array<i64: 1, 8>}, {pipeline_mode = #tpu.pipeline_mode<synchronous>, transform_indices = @transform_9, window_bounds = array<i64: 24, 16>}, {pipeline_mode = #tpu.pipeline_mode<synchronous>, transform_indices = @transform_10, window_bounds = array<i64: 1, 16>}, {pipeline_mode = #tpu.pipeline_mode<synchronous>, transform_indices = @transform_11, window_bounds = array<i64: 8, 16>}, {pipeline_mode = #tpu.pipeline_mode<synchronous>, transform_indices = @transform_12, window_bounds = array<i64: 1, 16>}, {pipeline_mode = #tpu.pipeline_mode<synchronous>, transform_indices = @transform_13, window_bounds = array<i64: 48, 16>}, {pipeline_mode = #tpu.pipeline_mode<synchronous>, transform_indices = @transform_14, window_bounds = array<i64: 1, 16>}, {pipeline_mode = #tpu.pipeline_mode<synchronous>, transform_indices = @transform_15, window_bounds = array<i64: 48, 32>}, {pipeline_mode = #tpu.pipeline_mode<synchronous>, transform_indices = @transform_16, window_bounds = array<i64: 1, 32>}, {pipeline_mode = #tpu.pipeline_mode<synchronous>, transform_indices = @transform_17, window_bounds = array<i64: 16, 32>}, {pipeline_mode = #tpu.pipeline_mode<synchronous>, transform_indices = @transform_18, window_bounds = array<i64: 1, 32>}, {pipeline_mode = #tpu.pipeline_mode<synchronous>, transform_indices = @transform_19, window_bounds = array<i64: 96, 32>}, {pipeline_mode = #tpu.pipeline_mode<synchronous>, transform_indices = @transform_20, window_bounds = array<i64: 1, 32>}, {pipeline_mode = #tpu.pipeline_mode<synchronous>, transform_indices = @transform_21, window_bounds = array<i64: 96, 64>}, {pipeline_mode = #tpu.pipeline_mode<synchronous>, transform_indices = @transform_22, window_bounds = array<i64: 1, 64>}, {pipeline_mode = #tpu.pipeline_mode<synchronous>, transform_indices = @transform_23, window_bounds = array<i64: 32, 64>}, {pipeline_mode = #tpu.pipeline_mode<synchronous>, transform_indices = @transform_24, window_bounds = array<i64: 1, 64>}, {pipeline_mode = #tpu.pipeline_mode<synchronous>, transform_indices = @transform_25, window_bounds = array<i64: 64, 10>}, {pipeline_mode = #tpu.pipeline_mode<synchronous>, transform_indices = @transform_26, window_bounds = array<i64: 1, 10>}, {transform_indices = @transform_27, window_bounds = array<i64: 1, 1, 10>}]} {
    %c0 = arith.constant 0 : index
    %c0_0 = arith.constant 0 : index
    %c0_1 = arith.constant 0 : index
    %0 = vector.load %arg1[%c0, %c0_0, %c0_1] : memref<1x64x2xf32, #tpu.memory_space<vmem>>, vector<1x64x2xf32>
    %1 = vector.shape_cast %0 : vector<1x64x2xf32> to vector<64x2xf32>
    %2 = tpu.iota {dimensions = array<i32: 0>} : vector<64x2xi32>
    %c1_i32 = arith.constant 1 : i32
    %3 = tpu.dynamic_rotate %1 by %c1_i32 dim 0 : vector<64x2xf32>, i32 -> vector<64x2xf32>
    %c0_i32 = arith.constant 0 : i32
    %4 = vector.broadcast %c0_i32 : i32 to vector<64x2xi32>
    %5 = arith.cmpi eq, %2, %4 : vector<64x2xi32>
    %cst = arith.constant 0.000000e+00 : f32
    %6 = vector.broadcast %cst : f32 to vector<64x2xf32>
    %7 = arith.select %5, %6, %3 : vector<64x2xi1>, vector<64x2xf32>
    %c63_i32 = arith.constant 63 : i32
    %8 = tpu.dynamic_rotate %1 by %c63_i32 dim 0 : vector<64x2xf32>, i32 -> vector<64x2xf32>
    %c63_i32_2 = arith.constant 63 : i32
    %9 = vector.broadcast %c63_i32_2 : i32 to vector<64x2xi32>
    %10 = arith.cmpi eq, %2, %9 : vector<64x2xi32>
    %cst_3 = arith.constant 0.000000e+00 : f32
    %11 = vector.broadcast %cst_3 : f32 to vector<64x2xf32>
    %12 = arith.select %10, %11, %8 : vector<64x2xi1>, vector<64x2xf32>
    %13 = tpu.concatenate %7, %1, %12 in 1 : vector<64x2xf32>, vector<64x2xf32>, vector<64x2xf32> -> vector<64x6xf32>
    %c0_4 = arith.constant 0 : index
    %c0_5 = arith.constant 0 : index
    %14 = vector.load %arg2[%c0_4, %c0_5] : memref<6x4xf32, #tpu.memory_space<vmem>>, vector<6x4xf32>
    %cst_6 = arith.constant dense<0.000000e+00> : vector<64x4xf32>
    %15 = tpu.matmul %13, %14, %cst_6 {dimension_numbers = #tpu.dot_dimension_numbers<[1], [0], [0], [1], [0, 0, 1, 1], [], []>} : vector<64x6xf32>, vector<6x4xf32>, vector<64x4xf32> -> vector<64x4xf32>
    %c0_7 = arith.constant 0 : index
    %c0_8 = arith.constant 0 : index
    %16 = vector.load %arg3[%c0_7, %c0_8] : memref<1x4xf32, #tpu.memory_space<vmem>>, vector<1x4xf32>
    %17 = vector.broadcast %16 : vector<1x4xf32> to vector<64x4xf32>
    %18 = arith.addf %15, %17 : vector<64x4xf32>
    %cst_9 = arith.constant 0.000000e+00 : f32
    %19 = vector.broadcast %cst_9 : f32 to vector<64x4xf32>
    %20 = arith.maximumf %18, %19 : vector<64x4xf32>
    %21 = tpu.iota {dimensions = array<i32: 0>} : vector<64x4xi32>
    %c1_i32_10 = arith.constant 1 : i32
    %22 = tpu.dynamic_rotate %20 by %c1_i32_10 dim 0 : vector<64x4xf32>, i32 -> vector<64x4xf32>
    %c0_i32_11 = arith.constant 0 : i32
    %23 = vector.broadcast %c0_i32_11 : i32 to vector<64x4xi32>
    %24 = arith.cmpi eq, %21, %23 : vector<64x4xi32>
    %cst_12 = arith.constant 0.000000e+00 : f32
    %25 = vector.broadcast %cst_12 : f32 to vector<64x4xf32>
    %26 = arith.select %24, %25, %22 : vector<64x4xi1>, vector<64x4xf32>
    %c63_i32_13 = arith.constant 63 : i32
    %27 = tpu.dynamic_rotate %20 by %c63_i32_13 dim 0 : vector<64x4xf32>, i32 -> vector<64x4xf32>
    %c63_i32_14 = arith.constant 63 : i32
    %28 = vector.broadcast %c63_i32_14 : i32 to vector<64x4xi32>
    %29 = arith.cmpi eq, %21, %28 : vector<64x4xi32>
    %cst_15 = arith.constant 0.000000e+00 : f32
    %30 = vector.broadcast %cst_15 : f32 to vector<64x4xf32>
    %31 = arith.select %29, %30, %27 : vector<64x4xi1>, vector<64x4xf32>
    %32 = tpu.concatenate %26, %20, %31 in 1 : vector<64x4xf32>, vector<64x4xf32>, vector<64x4xf32> -> vector<64x12xf32>
    %c0_16 = arith.constant 0 : index
    %c0_17 = arith.constant 0 : index
    %33 = vector.load %arg4[%c0_16, %c0_17] : memref<12x8xf32, #tpu.memory_space<vmem>>, vector<12x8xf32>
    %cst_18 = arith.constant dense<0.000000e+00> : vector<64x8xf32>
    %34 = tpu.matmul %32, %33, %cst_18 {dimension_numbers = #tpu.dot_dimension_numbers<[1], [0], [0], [1], [0, 0, 1, 1], [], []>} : vector<64x12xf32>, vector<12x8xf32>, vector<64x8xf32> -> vector<64x8xf32>
    %c0_19 = arith.constant 0 : index
    %c0_20 = arith.constant 0 : index
    %35 = vector.load %arg5[%c0_19, %c0_20] : memref<1x8xf32, #tpu.memory_space<vmem>>, vector<1x8xf32>
    %36 = vector.broadcast %35 : vector<1x8xf32> to vector<64x8xf32>
    %37 = arith.addf %34, %36 : vector<64x8xf32>
    %c0_21 = arith.constant 0 : index
    %c0_22 = arith.constant 0 : index
    %38 = vector.load %arg6[%c0_21, %c0_22] : memref<2x8xf32, #tpu.memory_space<vmem>>, vector<2x8xf32>
    %cst_23 = arith.constant dense<0.000000e+00> : vector<64x8xf32>
    %39 = tpu.matmul %1, %38, %cst_23 {dimension_numbers = #tpu.dot_dimension_numbers<[1], [0], [0], [1], [0, 0, 1, 1], [], []>} : vector<64x2xf32>, vector<2x8xf32>, vector<64x8xf32> -> vector<64x8xf32>
    %c0_24 = arith.constant 0 : index
    %c0_25 = arith.constant 0 : index
    %40 = vector.load %arg7[%c0_24, %c0_25] : memref<1x8xf32, #tpu.memory_space<vmem>>, vector<1x8xf32>
    %41 = vector.broadcast %40 : vector<1x8xf32> to vector<64x8xf32>
    %42 = arith.addf %39, %41 : vector<64x8xf32>
    %43 = arith.addf %37, %42 : vector<64x8xf32>
    %cst_26 = arith.constant 0.000000e+00 : f32
    %44 = vector.broadcast %cst_26 : f32 to vector<64x8xf32>
    %45 = arith.maximumf %43, %44 : vector<64x8xf32>
    %c0_27 = arith.constant 0 : index
    %c0_28 = arith.constant 0 : index
    %46 = vector.load %arg29[%c0_27, %c0_28] : memref<64x8xf32, #tpu.memory_space<vmem>>, vector<64x8xf32>
    tpu.vector_store %arg29[%c0_27, %c0_28], %45 {strides = array<i32>} : memref<64x8xf32, #tpu.memory_space<vmem>>, vector<64x8xf32>,
    %c0_29 = arith.constant 0 : index
    %c0_30 = arith.constant 0 : index
    %47 = tpu.strided_load %arg29[%c0_29, %c0_30] {strides = array<i32: 2, 1>} : memref<64x8xf32, #tpu.memory_space<vmem>>, vector<32x8xf32>
    %c1 = arith.constant 1 : index
    %c0_31 = arith.constant 0 : index
    %48 = tpu.strided_load %arg29[%c1, %c0_31] {strides = array<i32: 2, 1>} : memref<64x8xf32, #tpu.memory_space<vmem>>, vector<32x8xf32>
    %49 = arith.maximumf %47, %48 : vector<32x8xf32>
    %50 = tpu.iota {dimensions = array<i32: 0>} : vector<32x8xi32>
    %c1_i32_32 = arith.constant 1 : i32
    %51 = tpu.dynamic_rotate %49 by %c1_i32_32 dim 0 : vector<32x8xf32>, i32 -> vector<32x8xf32>
    %c0_i32_33 = arith.constant 0 : i32
    %52 = vector.broadcast %c0_i32_33 : i32 to vector<32x8xi32>
    %53 = arith.cmpi eq, %50, %52 : vector<32x8xi32>
    %cst_34 = arith.constant 0.000000e+00 : f32
    %54 = vector.broadcast %cst_34 : f32 to vector<32x8xf32>
    %55 = arith.select %53, %54, %51 : vector<32x8xi1>, vector<32x8xf32>
    %c31_i32 = arith.constant 31 : i32
    %56 = tpu.dynamic_rotate %49 by %c31_i32 dim 0 : vector<32x8xf32>, i32 -> vector<32x8xf32>
    %c31_i32_35 = arith.constant 31 : i32
    %57 = vector.broadcast %c31_i32_35 : i32 to vector<32x8xi32>
    %58 = arith.cmpi eq, %50, %57 : vector<32x8xi32>
    %cst_36 = arith.constant 0.000000e+00 : f32
    %59 = vector.broadcast %cst_36 : f32 to vector<32x8xf32>
    %60 = arith.select %58, %59, %56 : vector<32x8xi1>, vector<32x8xf32>
    %61 = tpu.concatenate %55, %49, %60 in 1 : vector<32x8xf32>, vector<32x8xf32>, vector<32x8xf32> -> vector<32x24xf32>
    %c0_37 = arith.constant 0 : index
    %c0_38 = arith.constant 0 : index
    %62 = vector.load %arg8[%c0_37, %c0_38] : memref<24x8xf32, #tpu.memory_space<vmem>>, vector<24x8xf32>
    %cst_39 = arith.constant dense<0.000000e+00> : vector<32x8xf32>
    %63 = tpu.matmul %61, %62, %cst_39 {dimension_numbers = #tpu.dot_dimension_numbers<[1], [0], [0], [1], [0, 0, 1, 1], [], []>} : vector<32x24xf32>, vector<24x8xf32>, vector<32x8xf32> -> vector<32x8xf32>
    %c0_40 = arith.constant 0 : index
    %c0_41 = arith.constant 0 : index
    %64 = vector.load %arg9[%c0_40, %c0_41] : memref<1x8xf32, #tpu.memory_space<vmem>>, vector<1x8xf32>
    %65 = vector.broadcast %64 : vector<1x8xf32> to vector<32x8xf32>
    %66 = arith.addf %63, %65 : vector<32x8xf32>
    %cst_42 = arith.constant 0.000000e+00 : f32
    %67 = vector.broadcast %cst_42 : f32 to vector<32x8xf32>
    %68 = arith.maximumf %66, %67 : vector<32x8xf32>
    %69 = tpu.iota {dimensions = array<i32: 0>} : vector<32x8xi32>
    %c1_i32_43 = arith.constant 1 : i32
    %70 = tpu.dynamic_rotate %68 by %c1_i32_43 dim 0 : vector<32x8xf32>, i32 -> vector<32x8xf32>
    %c0_i32_44 = arith.constant 0 : i32
    %71 = vector.broadcast %c0_i32_44 : i32 to vector<32x8xi32>
    %72 = arith.cmpi eq, %69, %71 : vector<32x8xi32>
    %cst_45 = arith.constant 0.000000e+00 : f32
    %73 = vector.broadcast %cst_45 : f32 to vector<32x8xf32>
    %74 = arith.select %72, %73, %70 : vector<32x8xi1>, vector<32x8xf32>
    %c31_i32_46 = arith.constant 31 : i32
    %75 = tpu.dynamic_rotate %68 by %c31_i32_46 dim 0 : vector<32x8xf32>, i32 -> vector<32x8xf32>
    %c31_i32_47 = arith.constant 31 : i32
    %76 = vector.broadcast %c31_i32_47 : i32 to vector<32x8xi32>
    %77 = arith.cmpi eq, %69, %76 : vector<32x8xi32>
    %cst_48 = arith.constant 0.000000e+00 : f32
    %78 = vector.broadcast %cst_48 : f32 to vector<32x8xf32>
    %79 = arith.select %77, %78, %75 : vector<32x8xi1>, vector<32x8xf32>
    %80 = tpu.concatenate %74, %68, %79 in 1 : vector<32x8xf32>, vector<32x8xf32>, vector<32x8xf32> -> vector<32x24xf32>
    %c0_49 = arith.constant 0 : index
    %c0_50 = arith.constant 0 : index
    %81 = vector.load %arg10[%c0_49, %c0_50] : memref<24x16xf32, #tpu.memory_space<vmem>>, vector<24x16xf32>
    %cst_51 = arith.constant dense<0.000000e+00> : vector<32x16xf32>
    %82 = tpu.matmul %80, %81, %cst_51 {dimension_numbers = #tpu.dot_dimension_numbers<[1], [0], [0], [1], [0, 0, 1, 1], [], []>} : vector<32x24xf32>, vector<24x16xf32>, vector<32x16xf32> -> vector<32x16xf32>
    %c0_52 = arith.constant 0 : index
    %c0_53 = arith.constant 0 : index
    %83 = vector.load %arg11[%c0_52, %c0_53] : memref<1x16xf32, #tpu.memory_space<vmem>>, vector<1x16xf32>
    %84 = vector.broadcast %83 : vector<1x16xf32> to vector<32x16xf32>
    %85 = arith.addf %82, %84 : vector<32x16xf32>
    %c0_54 = arith.constant 0 : index
    %c0_55 = arith.constant 0 : index
    %86 = vector.load %arg12[%c0_54, %c0_55] : memref<8x16xf32, #tpu.memory_space<vmem>>, vector<8x16xf32>
    %cst_56 = arith.constant dense<0.000000e+00> : vector<32x16xf32>
    %87 = tpu.matmul %49, %86, %cst_56 {dimension_numbers = #tpu.dot_dimension_numbers<[1], [0], [0], [1], [0, 0, 1, 1], [], []>} : vector<32x8xf32>, vector<8x16xf32>, vector<32x16xf32> -> vector<32x16xf32>
    %c0_57 = arith.constant 0 : index
    %c0_58 = arith.constant 0 : index
    %88 = vector.load %arg13[%c0_57, %c0_58] : memref<1x16xf32, #tpu.memory_space<vmem>>, vector<1x16xf32>
    %89 = vector.broadcast %88 : vector<1x16xf32> to vector<32x16xf32>
    %90 = arith.addf %87, %89 : vector<32x16xf32>
    %91 = arith.addf %85, %90 : vector<32x16xf32>
    %cst_59 = arith.constant 0.000000e+00 : f32
    %92 = vector.broadcast %cst_59 : f32 to vector<32x16xf32>
    %93 = arith.maximumf %91, %92 : vector<32x16xf32>
    %c0_60 = arith.constant 0 : index
    %c0_61 = arith.constant 0 : index
    %94 = vector.load %arg30[%c0_60, %c0_61] : memref<32x16xf32, #tpu.memory_space<vmem>>, vector<32x16xf32>
    tpu.vector_store %arg30[%c0_60, %c0_61], %93 {strides = array<i32>} : memref<32x16xf32, #tpu.memory_space<vmem>>, vector<32x16xf32>,
    %c0_62 = arith.constant 0 : index
    %c0_63 = arith.constant 0 : index
    %95 = tpu.strided_load %arg30[%c0_62, %c0_63] {strides = array<i32: 2, 1>} : memref<32x16xf32, #tpu.memory_space<vmem>>, vector<16x16xf32>
    %c1_64 = arith.constant 1 : index
    %c0_65 = arith.constant 0 : index
    %96 = tpu.strided_load %arg30[%c1_64, %c0_65] {strides = array<i32: 2, 1>} : memref<32x16xf32, #tpu.memory_space<vmem>>, vector<16x16xf32>
    %97 = arith.maximumf %95, %96 : vector<16x16xf32>
    %98 = tpu.iota {dimensions = array<i32: 0>} : vector<16x16xi32>
    %c1_i32_66 = arith.constant 1 : i32
    %99 = tpu.dynamic_rotate %97 by %c1_i32_66 dim 0 : vector<16x16xf32>, i32 -> vector<16x16xf32>
    %c0_i32_67 = arith.constant 0 : i32
    %100 = vector.broadcast %c0_i32_67 : i32 to vector<16x16xi32>
    %101 = arith.cmpi eq, %98, %100 : vector<16x16xi32>
    %cst_68 = arith.constant 0.000000e+00 : f32
    %102 = vector.broadcast %cst_68 : f32 to vector<16x16xf32>
    %103 = arith.select %101, %102, %99 : vector<16x16xi1>, vector<16x16xf32>
    %c15_i32 = arith.constant 15 : i32
    %104 = tpu.dynamic_rotate %97 by %c15_i32 dim 0 : vector<16x16xf32>, i32 -> vector<16x16xf32>
    %c15_i32_69 = arith.constant 15 : i32
    %105 = vector.broadcast %c15_i32_69 : i32 to vector<16x16xi32>
    %106 = arith.cmpi eq, %98, %105 : vector<16x16xi32>
    %cst_70 = arith.constant 0.000000e+00 : f32
    %107 = vector.broadcast %cst_70 : f32 to vector<16x16xf32>
    %108 = arith.select %106, %107, %104 : vector<16x16xi1>, vector<16x16xf32>
    %109 = tpu.concatenate %103, %97, %108 in 1 : vector<16x16xf32>, vector<16x16xf32>, vector<16x16xf32> -> vector<16x48xf32>
    %c0_71 = arith.constant 0 : index
    %c0_72 = arith.constant 0 : index
    %110 = vector.load %arg14[%c0_71, %c0_72] : memref<48x16xf32, #tpu.memory_space<vmem>>, vector<48x16xf32>
    %cst_73 = arith.constant dense<0.000000e+00> : vector<16x16xf32>
    %111 = tpu.matmul %109, %110, %cst_73 {dimension_numbers = #tpu.dot_dimension_numbers<[1], [0], [0], [1], [0, 0, 1, 1], [], []>} : vector<16x48xf32>, vector<48x16xf32>, vector<16x16xf32> -> vector<16x16xf32>
    %c0_74 = arith.constant 0 : index
    %c0_75 = arith.constant 0 : index
    %112 = vector.load %arg15[%c0_74, %c0_75] : memref<1x16xf32, #tpu.memory_space<vmem>>, vector<1x16xf32>
    %113 = vector.broadcast %112 : vector<1x16xf32> to vector<16x16xf32>
    %114 = arith.addf %111, %113 : vector<16x16xf32>
    %cst_76 = arith.constant 0.000000e+00 : f32
    %115 = vector.broadcast %cst_76 : f32 to vector<16x16xf32>
    %116 = arith.maximumf %114, %115 : vector<16x16xf32>
    %117 = tpu.iota {dimensions = array<i32: 0>} : vector<16x16xi32>
    %c1_i32_77 = arith.constant 1 : i32
    %118 = tpu.dynamic_rotate %116 by %c1_i32_77 dim 0 : vector<16x16xf32>, i32 -> vector<16x16xf32>
    %c0_i32_78 = arith.constant 0 : i32
    %119 = vector.broadcast %c0_i32_78 : i32 to vector<16x16xi32>
    %120 = arith.cmpi eq, %117, %119 : vector<16x16xi32>
    %cst_79 = arith.constant 0.000000e+00 : f32
    %121 = vector.broadcast %cst_79 : f32 to vector<16x16xf32>
    %122 = arith.select %120, %121, %118 : vector<16x16xi1>, vector<16x16xf32>
    %c15_i32_80 = arith.constant 15 : i32
    %123 = tpu.dynamic_rotate %116 by %c15_i32_80 dim 0 : vector<16x16xf32>, i32 -> vector<16x16xf32>
    %c15_i32_81 = arith.constant 15 : i32
    %124 = vector.broadcast %c15_i32_81 : i32 to vector<16x16xi32>
    %125 = arith.cmpi eq, %117, %124 : vector<16x16xi32>
    %cst_82 = arith.constant 0.000000e+00 : f32
    %126 = vector.broadcast %cst_82 : f32 to vector<16x16xf32>
    %127 = arith.select %125, %126, %123 : vector<16x16xi1>, vector<16x16xf32>
    %128 = tpu.concatenate %122, %116, %127 in 1 : vector<16x16xf32>, vector<16x16xf32>, vector<16x16xf32> -> vector<16x48xf32>
    %c0_83 = arith.constant 0 : index
    %c0_84 = arith.constant 0 : index
    %129 = vector.load %arg16[%c0_83, %c0_84] : memref<48x32xf32, #tpu.memory_space<vmem>>, vector<48x32xf32>
    %cst_85 = arith.constant dense<0.000000e+00> : vector<16x32xf32>
    %130 = tpu.matmul %128, %129, %cst_85 {dimension_numbers = #tpu.dot_dimension_numbers<[1], [0], [0], [1], [0, 0, 1, 1], [], []>} : vector<16x48xf32>, vector<48x32xf32>, vector<16x32xf32> -> vector<16x32xf32>
    %c0_86 = arith.constant 0 : index
    %c0_87 = arith.constant 0 : index
    %131 = vector.load %arg17[%c0_86, %c0_87] : memref<1x32xf32, #tpu.memory_space<vmem>>, vector<1x32xf32>
    %132 = vector.broadcast %131 : vector<1x32xf32> to vector<16x32xf32>
    %133 = arith.addf %130, %132 : vector<16x32xf32>
    %c0_88 = arith.constant 0 : index
    %c0_89 = arith.constant 0 : index
    %134 = vector.load %arg18[%c0_88, %c0_89] : memref<16x32xf32, #tpu.memory_space<vmem>>, vector<16x32xf32>
    %cst_90 = arith.constant dense<0.000000e+00> : vector<16x32xf32>
    %135 = tpu.matmul %97, %134, %cst_90 {dimension_numbers = #tpu.dot_dimension_numbers<[1], [0], [0], [1], [0, 0, 1, 1], [], []>} : vector<16x16xf32>, vector<16x32xf32>, vector<16x32xf32> -> vector<16x32xf32>
    %c0_91 = arith.constant 0 : index
    %c0_92 = arith.constant 0 : index
    %136 = vector.load %arg19[%c0_91, %c0_92] : memref<1x32xf32, #tpu.memory_space<vmem>>, vector<1x32xf32>
    %137 = vector.broadcast %136 : vector<1x32xf32> to vector<16x32xf32>
    %138 = arith.addf %135, %137 : vector<16x32xf32>
    %139 = arith.addf %133, %138 : vector<16x32xf32>
    %cst_93 = arith.constant 0.000000e+00 : f32
    %140 = vector.broadcast %cst_93 : f32 to vector<16x32xf32>
    %141 = arith.maximumf %139, %140 : vector<16x32xf32>
    %c0_94 = arith.constant 0 : index
    %c0_95 = arith.constant 0 : index
    %142 = vector.load %arg31[%c0_94, %c0_95] : memref<16x32xf32, #tpu.memory_space<vmem>>, vector<16x32xf32>
    tpu.vector_store %arg31[%c0_94, %c0_95], %141 {strides = array<i32>} : memref<16x32xf32, #tpu.memory_space<vmem>>, vector<16x32xf32>,
    %c0_96 = arith.constant 0 : index
    %c0_97 = arith.constant 0 : index
    %143 = tpu.strided_load %arg31[%c0_96, %c0_97] {strides = array<i32: 2, 1>} : memref<16x32xf32, #tpu.memory_space<vmem>>, vector<8x32xf32>
    %c1_98 = arith.constant 1 : index
    %c0_99 = arith.constant 0 : index
    %144 = tpu.strided_load %arg31[%c1_98, %c0_99] {strides = array<i32: 2, 1>} : memref<16x32xf32, #tpu.memory_space<vmem>>, vector<8x32xf32>
    %145 = arith.maximumf %143, %144 : vector<8x32xf32>
    %146 = tpu.iota {dimensions = array<i32: 0>} : vector<8x32xi32>
    %c1_i32_100 = arith.constant 1 : i32
    %147 = tpu.dynamic_rotate %145 by %c1_i32_100 dim 0 : vector<8x32xf32>, i32 -> vector<8x32xf32>
    %c0_i32_101 = arith.constant 0 : i32
    %148 = vector.broadcast %c0_i32_101 : i32 to vector<8x32xi32>
    %149 = arith.cmpi eq, %146, %148 : vector<8x32xi32>
    %cst_102 = arith.constant 0.000000e+00 : f32
    %150 = vector.broadcast %cst_102 : f32 to vector<8x32xf32>
    %151 = arith.select %149, %150, %147 : vector<8x32xi1>, vector<8x32xf32>
    %c7_i32 = arith.constant 7 : i32
    %152 = tpu.dynamic_rotate %145 by %c7_i32 dim 0 : vector<8x32xf32>, i32 -> vector<8x32xf32>
    %c7_i32_103 = arith.constant 7 : i32
    %153 = vector.broadcast %c7_i32_103 : i32 to vector<8x32xi32>
    %154 = arith.cmpi eq, %146, %153 : vector<8x32xi32>
    %cst_104 = arith.constant 0.000000e+00 : f32
    %155 = vector.broadcast %cst_104 : f32 to vector<8x32xf32>
    %156 = arith.select %154, %155, %152 : vector<8x32xi1>, vector<8x32xf32>
    %157 = tpu.concatenate %151, %145, %156 in 1 : vector<8x32xf32>, vector<8x32xf32>, vector<8x32xf32> -> vector<8x96xf32>
    %c0_105 = arith.constant 0 : index
    %c0_106 = arith.constant 0 : index
    %158 = vector.load %arg20[%c0_105, %c0_106] : memref<96x32xf32, #tpu.memory_space<vmem>>, vector<96x32xf32>
    %cst_107 = arith.constant dense<0.000000e+00> : vector<8x32xf32>
    %159 = tpu.matmul %157, %158, %cst_107 {dimension_numbers = #tpu.dot_dimension_numbers<[1], [0], [0], [1], [0, 0, 1, 1], [], []>} : vector<8x96xf32>, vector<96x32xf32>, vector<8x32xf32> -> vector<8x32xf32>
    %c0_108 = arith.constant 0 : index
    %c0_109 = arith.constant 0 : index
    %160 = vector.load %arg21[%c0_108, %c0_109] : memref<1x32xf32, #tpu.memory_space<vmem>>, vector<1x32xf32>
    %161 = vector.broadcast %160 : vector<1x32xf32> to vector<8x32xf32>
    %162 = arith.addf %159, %161 : vector<8x32xf32>
    %cst_110 = arith.constant 0.000000e+00 : f32
    %163 = vector.broadcast %cst_110 : f32 to vector<8x32xf32>
    %164 = arith.maximumf %162, %163 : vector<8x32xf32>
    %165 = tpu.iota {dimensions = array<i32: 0>} : vector<8x32xi32>
    %c1_i32_111 = arith.constant 1 : i32
    %166 = tpu.dynamic_rotate %164 by %c1_i32_111 dim 0 : vector<8x32xf32>, i32 -> vector<8x32xf32>
    %c0_i32_112 = arith.constant 0 : i32
    %167 = vector.broadcast %c0_i32_112 : i32 to vector<8x32xi32>
    %168 = arith.cmpi eq, %165, %167 : vector<8x32xi32>
    %cst_113 = arith.constant 0.000000e+00 : f32
    %169 = vector.broadcast %cst_113 : f32 to vector<8x32xf32>
    %170 = arith.select %168, %169, %166 : vector<8x32xi1>, vector<8x32xf32>
    %c7_i32_114 = arith.constant 7 : i32
    %171 = tpu.dynamic_rotate %164 by %c7_i32_114 dim 0 : vector<8x32xf32>, i32 -> vector<8x32xf32>
    %c7_i32_115 = arith.constant 7 : i32
    %172 = vector.broadcast %c7_i32_115 : i32 to vector<8x32xi32>
    %173 = arith.cmpi eq, %165, %172 : vector<8x32xi32>
    %cst_116 = arith.constant 0.000000e+00 : f32
    %174 = vector.broadcast %cst_116 : f32 to vector<8x32xf32>
    %175 = arith.select %173, %174, %171 : vector<8x32xi1>, vector<8x32xf32>
    %176 = tpu.concatenate %170, %164, %175 in 1 : vector<8x32xf32>, vector<8x32xf32>, vector<8x32xf32> -> vector<8x96xf32>
    %c0_117 = arith.constant 0 : index
    %c0_118 = arith.constant 0 : index
    %177 = vector.load %arg22[%c0_117, %c0_118] : memref<96x64xf32, #tpu.memory_space<vmem>>, vector<96x64xf32>
    %cst_119 = arith.constant dense<0.000000e+00> : vector<8x64xf32>
    %178 = tpu.matmul %176, %177, %cst_119 {dimension_numbers = #tpu.dot_dimension_numbers<[1], [0], [0], [1], [0, 0, 1, 1], [], []>} : vector<8x96xf32>, vector<96x64xf32>, vector<8x64xf32> -> vector<8x64xf32>
    %c0_120 = arith.constant 0 : index
    %c0_121 = arith.constant 0 : index
    %179 = vector.load %arg23[%c0_120, %c0_121] : memref<1x64xf32, #tpu.memory_space<vmem>>, vector<1x64xf32>
    %180 = vector.broadcast %179 : vector<1x64xf32> to vector<8x64xf32>
    %181 = arith.addf %178, %180 : vector<8x64xf32>
    %c0_122 = arith.constant 0 : index
    %c0_123 = arith.constant 0 : index
    %182 = vector.load %arg24[%c0_122, %c0_123] : memref<32x64xf32, #tpu.memory_space<vmem>>, vector<32x64xf32>
    %cst_124 = arith.constant dense<0.000000e+00> : vector<8x64xf32>
    %183 = tpu.matmul %145, %182, %cst_124 {dimension_numbers = #tpu.dot_dimension_numbers<[1], [0], [0], [1], [0, 0, 1, 1], [], []>} : vector<8x32xf32>, vector<32x64xf32>, vector<8x64xf32> -> vector<8x64xf32>
    %c0_125 = arith.constant 0 : index
    %c0_126 = arith.constant 0 : index
    %184 = vector.load %arg25[%c0_125, %c0_126] : memref<1x64xf32, #tpu.memory_space<vmem>>, vector<1x64xf32>
    %185 = vector.broadcast %184 : vector<1x64xf32> to vector<8x64xf32>
    %186 = arith.addf %183, %185 : vector<8x64xf32>
    %187 = arith.addf %181, %186 : vector<8x64xf32>
    %cst_127 = arith.constant 0.000000e+00 : f32
    %188 = vector.broadcast %cst_127 : f32 to vector<8x64xf32>
    %189 = arith.maximumf %187, %188 : vector<8x64xf32>
    %c0_128 = arith.constant 0 : index
    %c0_129 = arith.constant 0 : index
    %190 = vector.load %arg32[%c0_128, %c0_129] : memref<8x64xf32, #tpu.memory_space<vmem>>, vector<8x64xf32>
    tpu.vector_store %arg32[%c0_128, %c0_129], %189 {strides = array<i32>} : memref<8x64xf32, #tpu.memory_space<vmem>>, vector<8x64xf32>,
    %c0_130 = arith.constant 0 : index
    %c0_131 = arith.constant 0 : index
    %191 = tpu.strided_load %arg32[%c0_130, %c0_131] {strides = array<i32: 2, 1>} : memref<8x64xf32, #tpu.memory_space<vmem>>, vector<4x64xf32>
    %c1_132 = arith.constant 1 : index
    %c0_133 = arith.constant 0 : index
    %192 = tpu.strided_load %arg32[%c1_132, %c0_133] {strides = array<i32: 2, 1>} : memref<8x64xf32, #tpu.memory_space<vmem>>, vector<4x64xf32>
    %193 = arith.maximumf %191, %192 : vector<4x64xf32>
    %cst_134 = arith.constant dense<0.000000e+00> : vector<64xf32>
    %194 = vector.multi_reduction <add>, %193, %cst_134 [0] : vector<4x64xf32> to vector<64xf32>
    %195 = vector.shape_cast %194 : vector<64xf32> to vector<1x64xf32>
    %cst_135 = arith.constant 4.000000e+00 : f32
    %196 = vector.broadcast %cst_135 : f32 to vector<1x64xf32>
    %197 = arith.divf %195, %196 : vector<1x64xf32>
    %c0_136 = arith.constant 0 : index
    %c0_137 = arith.constant 0 : index
    %198 = vector.load %arg26[%c0_136, %c0_137] : memref<64x10xf32, #tpu.memory_space<vmem>>, vector<64x10xf32>
    %cst_138 = arith.constant dense<0.000000e+00> : vector<1x10xf32>
    %199 = tpu.matmul %197, %198, %cst_138 {dimension_numbers = #tpu.dot_dimension_numbers<[1], [0], [0], [1], [0, 0, 1, 1], [], []>} : vector<1x64xf32>, vector<64x10xf32>, vector<1x10xf32> -> vector<1x10xf32>
    %c0_139 = arith.constant 0 : index
    %c0_140 = arith.constant 0 : index
    %200 = vector.load %arg27[%c0_139, %c0_140] : memref<1x10xf32, #tpu.memory_space<vmem>>, vector<1x10xf32>
    %201 = arith.addf %199, %200 : vector<1x10xf32>
    %c0_141 = arith.constant 0 : index
    %c0_142 = arith.constant 0 : index
    %c0_143 = arith.constant 0 : index
    %202 = vector.load %arg28[%c0_141, %c0_142, %c0_143] : memref<1x1x10xf32, #tpu.memory_space<vmem>>, vector<1x1x10xf32>
    %203 = vector.shape_cast %202 : vector<1x1x10xf32> to vector<1x10xf32>
    %204 = vector.shape_cast %201 : vector<1x10xf32> to vector<1x1x10xf32>
    tpu.vector_store %arg28[%c0_141, %c0_142, %c0_143], %204 {strides = array<i32>} : memref<1x1x10xf32, #tpu.memory_space<vmem>>, vector<1x1x10xf32>,
    return
  }
  func.func @transform_0(%arg0: i32) -> (i32, i32, i32) {
    %c0_i32 = arith.constant 0 : i32
    %c0_i32_0 = arith.constant 0 : i32
    %c0_i32_1 = arith.constant 0 : i32
    return %arg0, %c0_i32, %c0_i32_0 : i32, i32, i32
  }
  func.func @transform_1(%arg0: i32) -> (i32, i32) {
    %c0_i32 = arith.constant 0 : i32
    %c0_i32_0 = arith.constant 0 : i32
    %c0_i32_1 = arith.constant 0 : i32
    return %c0_i32, %c0_i32_0 : i32, i32
  }
  func.func @transform_2(%arg0: i32) -> (i32, i32) {
    %c0_i32 = arith.constant 0 : i32
    %c0_i32_0 = arith.constant 0 : i32
    %c0_i32_1 = arith.constant 0 : i32
    return %c0_i32, %c0_i32_0 : i32, i32
  }
  func.func @transform_3(%arg0: i32) -> (i32, i32) {
    %c0_i32 = arith.constant 0 : i32
    %c0_i32_0 = arith.constant 0 : i32
    %c0_i32_1 = arith.constant 0 : i32
    return %c0_i32, %c0_i32_0 : i32, i32
  }
  func.func @transform_4(%arg0: i32) -> (i32, i32) {
    %c0_i32 = arith.constant 0 : i32
    %c0_i32_0 = arith.constant 0 : i32
    %c0_i32_1 = arith.constant 0 : i32
    return %c0_i32, %c0_i32_0 : i32, i32
  }
  func.func @transform_5(%arg0: i32) -> (i32, i32) {
    %c0_i32 = arith.constant 0 : i32
    %c0_i32_0 = arith.constant 0 : i32
    %c0_i32_1 = arith.constant 0 : i32
    return %c0_i32, %c0_i32_0 : i32, i32
  }
  func.func @transform_6(%arg0: i32) -> (i32, i32) {
    %c0_i32 = arith.constant 0 : i32
    %c0_i32_0 = arith.constant 0 : i32
    %c0_i32_1 = arith.constant 0 : i32
    return %c0_i32, %c0_i32_0 : i32, i32
  }
  func.func @transform_7(%arg0: i32) -> (i32, i32) {
    %c0_i32 = arith.constant 0 : i32
    %c0_i32_0 = arith.constant 0 : i32
    %c0_i32_1 = arith.constant 0 : i32
    return %c0_i32, %c0_i32_0 : i32, i32
  }
  func.func @transform_8(%arg0: i32) -> (i32, i32) {
    %c0_i32 = arith.constant 0 : i32
    %c0_i32_0 = arith.constant 0 : i32
    %c0_i32_1 = arith.constant 0 : i32
    return %c0_i32, %c0_i32_0 : i32, i32
  }
  func.func @transform_9(%arg0: i32) -> (i32, i32) {
    %c0_i32 = arith.constant 0 : i32
    %c0_i32_0 = arith.constant 0 : i32
    %c0_i32_1 = arith.constant 0 : i32
    return %c0_i32, %c0_i32_0 : i32, i32
  }
  func.func @transform_10(%arg0: i32) -> (i32, i32) {
    %c0_i32 = arith.constant 0 : i32
    %c0_i32_0 = arith.constant 0 : i32
    %c0_i32_1 = arith.constant 0 : i32
    return %c0_i32, %c0_i32_0 : i32, i32
  }
  func.func @transform_11(%arg0: i32) -> (i32, i32) {
    %c0_i32 = arith.constant 0 : i32
    %c0_i32_0 = arith.constant 0 : i32
    %c0_i32_1 = arith.constant 0 : i32
    return %c0_i32, %c0_i32_0 : i32, i32
  }
  func.func @transform_12(%arg0: i32) -> (i32, i32) {
    %c0_i32 = arith.constant 0 : i32
    %c0_i32_0 = arith.constant 0 : i32
    %c0_i32_1 = arith.constant 0 : i32
    return %c0_i32, %c0_i32_0 : i32, i32
  }
  func.func @transform_13(%arg0: i32) -> (i32, i32) {
    %c0_i32 = arith.constant 0 : i32
    %c0_i32_0 = arith.constant 0 : i32
    %c0_i32_1 = arith.constant 0 : i32
    return %c0_i32, %c0_i32_0 : i32, i32
  }
  func.func @transform_14(%arg0: i32) -> (i32, i32) {
    %c0_i32 = arith.constant 0 : i32
    %c0_i32_0 = arith.constant 0 : i32
    %c0_i32_1 = arith.constant 0 : i32
    return %c0_i32, %c0_i32_0 : i32, i32
  }
  func.func @transform_15(%arg0: i32) -> (i32, i32) {
    %c0_i32 = arith.constant 0 : i32
    %c0_i32_0 = arith.constant 0 : i32
    %c0_i32_1 = arith.constant 0 : i32
    return %c0_i32, %c0_i32_0 : i32, i32
  }
  func.func @transform_16(%arg0: i32) -> (i32, i32) {
    %c0_i32 = arith.constant 0 : i32
    %c0_i32_0 = arith.constant 0 : i32
    %c0_i32_1 = arith.constant 0 : i32
    return %c0_i32, %c0_i32_0 : i32, i32
  }
  func.func @transform_17(%arg0: i32) -> (i32, i32) {
    %c0_i32 = arith.constant 0 : i32
    %c0_i32_0 = arith.constant 0 : i32
    %c0_i32_1 = arith.constant 0 : i32
    return %c0_i32, %c0_i32_0 : i32, i32
  }
  func.func @transform_18(%arg0: i32) -> (i32, i32) {
    %c0_i32 = arith.constant 0 : i32
    %c0_i32_0 = arith.constant 0 : i32
    %c0_i32_1 = arith.constant 0 : i32
    return %c0_i32, %c0_i32_0 : i32, i32
  }
  func.func @transform_19(%arg0: i32) -> (i32, i32) {
    %c0_i32 = arith.constant 0 : i32
    %c0_i32_0 = arith.constant 0 : i32
    %c0_i32_1 = arith.constant 0 : i32
    return %c0_i32, %c0_i32_0 : i32, i32
  }
  func.func @transform_20(%arg0: i32) -> (i32, i32) {
    %c0_i32 = arith.constant 0 : i32
    %c0_i32_0 = arith.constant 0 : i32
    %c0_i32_1 = arith.constant 0 : i32
    return %c0_i32, %c0_i32_0 : i32, i32
  }
  func.func @transform_21(%arg0: i32) -> (i32, i32) {
    %c0_i32 = arith.constant 0 : i32
    %c0_i32_0 = arith.constant 0 : i32
    %c0_i32_1 = arith.constant 0 : i32
    return %c0_i32, %c0_i32_0 : i32, i32
  }
  func.func @transform_22(%arg0: i32) -> (i32, i32) {
    %c0_i32 = arith.constant 0 : i32
    %c0_i32_0 = arith.constant 0 : i32
    %c0_i32_1 = arith.constant 0 : i32
    return %c0_i32, %c0_i32_0 : i32, i32
  }
  func.func @transform_23(%arg0: i32) -> (i32, i32) {
    %c0_i32 = arith.constant 0 : i32
    %c0_i32_0 = arith.constant 0 : i32
    %c0_i32_1 = arith.constant 0 : i32
    return %c0_i32, %c0_i32_0 : i32, i32
  }
  func.func @transform_24(%arg0: i32) -> (i32, i32) {
    %c0_i32 = arith.constant 0 : i32
    %c0_i32_0 = arith.constant 0 : i32
    %c0_i32_1 = arith.constant 0 : i32
    return %c0_i32, %c0_i32_0 : i32, i32
  }
  func.func @transform_25(%arg0: i32) -> (i32, i32) {
    %c0_i32 = arith.constant 0 : i32
    %c0_i32_0 = arith.constant 0 : i32
    %c0_i32_1 = arith.constant 0 : i32
    return %c0_i32, %c0_i32_0 : i32, i32
  }
  func.func @transform_26(%arg0: i32) -> (i32, i32) {
    %c0_i32 = arith.constant 0 : i32
    %c0_i32_0 = arith.constant 0 : i32
    %c0_i32_1 = arith.constant 0 : i32
    return %c0_i32, %c0_i32_0 : i32, i32
  }
  func.func @transform_27(%arg0: i32) -> (i32, i32, i32) {
    %c0_i32 = arith.constant 0 : i32
    %c0_i32_0 = arith.constant 0 : i32
    %c0_i32_1 = arith.constant 0 : i32
    return %arg0, %c0_i32, %c0_i32_0 : i32, i32, i32
  }
}

</mosaic_0001>

<bundles_post_ra>
// kernel: model_forward.1
= control target key start
LH: loop header
LB: loop body
LE: loop exit
PB: predicated region body
PF: predicated region fallthrough
CT: control target
= control target key end

     0   :  { %s4460_s0 = inlined_call_operand.vmem [shape: f32[2,64,2], index: 0, kind: input, shape index: {}]   ;;  %s4461_s1 = inlined_call_operand.vmem [shape: f32[6,4], index: 1, kind: input, shape index: {}]   ;;  %s4462_s2 = inlined_call_operand.vmem [shape: f32[1,4], index: 2, kind: input, shape index: {}]   ;;  %s4463_s3 = inlined_call_operand.vmem [shape: f32[12,8], index: 3, kind: input, shape index: {}]   ;;  %s4464_s4 = inlined_call_operand.vmem [shape: f32[1,8], index: 4, kind: input, shape index: {}]   ;;  %s4465_s5 = inlined_call_operand.vmem [shape: f32[2,8], index: 5, kind: input, shape index: {}]   ;;  %s4466_s6 = inlined_call_operand.vmem [shape: f32[1,8], index: 6, kind: input, shape index: {}]   ;;  %s4467_s7 = inlined_call_operand.vmem [shape: f32[24,8], index: 7, kind: input, shape index: {}]   ;;  %s4468_s8 = inlined_call_operand.vmem [shape: f32[1,8], index: 8, kind: input, shape index: {}]   ;;  %s4469_s9 = inlined_call_operand.vmem [shape: f32[24,16], index: 9, kind: input, shape index: {}]   ;;  %s4470_s10 = inlined_call_operand.vmem [shape: f32[1,16], index: 10, kind: input, shape index: {}]   ;;  %s4471_s11 = inlined_call_operand.vmem [shape: f32[8,16], index: 11, kind: input, shape index: {}]   ;;  %s4472_s12 = inlined_call_operand.vmem [shape: f32[1,16], index: 12, kind: input, shape index: {}]   ;;  %s4473_s13 = inlined_call_operand.vmem [shape: f32[48,16], index: 13, kind: input, shape index: {}]   ;;  %s4474_s14 = inlined_call_operand.vmem [shape: f32[1,16], index: 14, kind: input, shape index: {}]   ;;  %s4475_s15 = inlined_call_operand.vmem [shape: f32[48,32], index: 15, kind: input, shape index: {}]   ;;  %s4476_s16 = inlined_call_operand.vmem [shape: f32[1,32], index: 16, kind: input, shape index: {}]   ;;  %s4477_s17 = inlined_call_operand.vmem [shape: f32[16,32], index: 17, kind: input, shape index: {}]   ;;  %s4478_s18 = inlined_call_operand.vmem [shape: f32[1,32], index: 18, kind: input, shape index: {}]   ;;  %s4479_s19 = inlined_call_operand.vmem [shape: f32[96,32], index: 19, kind: input, shape index: {}]   ;;  %s4480_s20 = inlined_call_operand.vmem [shape: f32[1,32], index: 20, kind: input, shape index: {}]   ;;  %s4481_s21 = inlined_call_operand.vmem [shape: f32[96,64], index: 21, kind: input, shape index: {}]   ;;  %s4482_s22 = inlined_call_operand.vmem [shape: f32[1,64], index: 22, kind: input, shape index: {}]   ;;  %s4483_s23 = inlined_call_operand.vmem [shape: f32[32,64], index: 23, kind: input, shape index: {}]   ;;  %s4484_s24 = inlined_call_operand.vmem [shape: f32[1,64], index: 24, kind: input, shape index: {}]   ;;  %s4485_s25 = inlined_call_operand.vmem [shape: f32[64,10], index: 25, kind: input, shape index: {}]   ;;  %s4486_s26 = inlined_call_operand.vmem [shape: f32[1,10], index: 26, kind: input, shape index: {}]   ;;  %s4487_s27 = inlined_call_operand.hbm [shape: f32[2,1,10], index: 27, kind: output, shape index: {}]  }
   0x1   :  { %4504 = sst [smem:[#allocation14_spill]] %s4460_s0 }
   0x2   :  { %4505 = sst [smem:[#allocation15_spill]] %s4461_s1 }
   0x3   :  { %4506 = sst [smem:[#allocation16_spill]] %s4462_s2 }
   0x4   :  { %4507 = sst [smem:[#allocation17_spill]] %s4463_s3 }
   0x5   :  { %4508 = sst [smem:[#allocation18_spill]] %s4464_s4 }
   0x6   :  { %4509 = sst [smem:[#allocation19_spill]] %s4465_s5 }
   0x7   :  { %4510 = sst [smem:[#allocation20_spill]] %s4466_s6 }
   0x8   :  { %4511 = sst [smem:[#allocation21_spill]] %s4467_s7 }
   0x9   :  { %4512 = sst [smem:[#allocation22_spill]] %s4468_s8 }
   0xa   :  { %4513 = sst [smem:[#allocation23_spill]] %s4469_s9 }
   0xb   :  { %4514 = sst [smem:[#allocation24_spill]] %s4470_s10 }
   0xc   :  { %4515 = sst [smem:[#allocation25_spill]] %s4471_s11 }
   0xd   :  { %4516 = sst [smem:[#allocation26_spill]] %s4472_s12 }
   0xe   :  { %32 = vsyncpa [#allocation7], 0 }
   0xf   :  { %34 = vsyncpa [#allocation7 + $0x1], 0  ;;  %s3660_s7 = smov 0   ;;  %s3662_s4 = smov 0  }
  0x10   :  { %s3664_s8 = smov 0   ;;  %s3666_s30 = smov 0  }
  0x11 LB: > { %4517 = sst [smem:[#allocation9_spill]] %s3495_s7  ;;  %s3681_s9 = sadd.s32 4294967295, %s3507_s30   ;;  %s3507_s30 = sphi %s3666_s30, %s4542_s30   ;;  %s3503_s8 = sphi %s3664_s8, %s4547_s8   ;;  %s3499_s4 = sphi %s3662_s4, %s4546_s4   ;;  %s3495_s7 = sphi %s3660_s7, %s4545_s7  }
  0x12   : > { %4518 = sst [smem:[#allocation10_spill]] %s3503_s8  ;;  %s2877_s5 = sadd.s32 4294967294, %s3507_s30  }
  0x13   : > { %s3685_s28 = sadd.s32 1, %s3507_s30   ;;  %s619_s0 = sadd.s32 1, %s3503_s8 }
  0x14   : > { %4519 = sst [smem:[#allocation11_spill]] %s3685_s28  ;;  %s616_s10 = ssub.s32 %s3507_s30, %s3685_s28 }
  0x15   : > { %p629_p0 = scmp.ne.s32.totalorder %s3503_s8, %s3499_s4  ;;  %p617_p1 = scmp.eq.s32.totalorder %s616_s10, 0 }
  0x16   : > { %p630_p2 = scmp.eq.s32.totalorder %s3681_s9, 1  ;;  %p635_p3 = scmp.ne.s32.totalorder %s3499_s4, %s3495_s7 }
  0x17   : > { %p636_p4 = scmp.eq.s32.totalorder %s2877_s5, 1  ;;  %p2880_p7 = scmp.ge.s32.totalorder %s3507_s30, 1 }
  0x18   : > { %s3696_s29 = scalar_select %p617_p1, %s3503_s8, %s619_s0  }
  0x19   : > { %p3698_p5 = por %p630_p2, %p629_p0  ;;  %p3702_p6 = por %p636_p4, %p635_p3 }
  0x1a   : > { %4520 = sst [smem:[#allocation12_spill]] %s3696_s29  ;;  %p740_p8 = scmp.lt.s32.totalorder %s3507_s30, 3 }
  0x1b   : > { %s4522_s6 = scalar_select %p3702_p6, 1, 0 }
  0x1c   : > { %p741_p9 = pnand %p2880_p7, %p740_p8 }
  0x1d   : > { %4523 = sst [smem:[#allocation13_spill]] %s4522_s6  ;;  %p811_p10 = scmp.lt.s32.totalorder (!%p741_p9), %s3681_s9, 1  ;;  %v824_v0 = vlaneseq (!%p741_p9)  ;;  %vm1014_vm0 = vcmask (!%p741_p9), 1045504   ;;  %vm963_vm5 = vcmask (!%p741_p9), 15360   ;;  %vm972_vm6 = vcmask (!%p741_p9), 31744  }
  0x1e   : > { %744 = sbr.rel (%p741_p9) target bundleno = 3112 (0xc28), region = 128  ;;  %s4524_s3 = sld [smem:[#allocation15_spill]] (!%p741_p9)  ;;  %vm989_vm7 = vcmask (!%p741_p9), 48128   ;;  %vm1294_vm8 = vcmask (!%p741_p9), 1043456   ;;  %vm3512_vm9 = vmmov (!%p741_p9), 1   ;;  %vm1427_vm11 = vcmask (!%p741_p9), 1041408  }
  0x1f   : > { %v3713_v2 = vshrl.u32 (!%p741_p9), %v824_v0, 7  ;;  %s4525_s8 = sld [smem:[#allocation14_spill]] (!%p741_p9)  ;;  %s3509_s11 = smov (!%p741_p9), 2   ;;  %vm3253_vm10 = vmpackc.low (!%p741_p9), %vm1294_vm8, %vm3512_vm9  ;;  %vm1251_vm12 = vcmask (!%p741_p9), 64512   ;;  %vm1269_vm13 = vcmask (!%p741_p9), 97280   ;;  %vm1643_vm15 = vcmask (!%p741_p9), 130048  }
  0x20   : > { %s4526_s2 = sld [smem:[#allocation16_spill]] (!%p741_p9)  ;;  %s4527_s10 = sld [smem:[#allocation17_spill]] (!%p741_p9)  ;;  %vm2444_vm8 = vcmask (!%p741_p9), 785408   ;;  %vm2807_vm9 = vcmask (!%p741_p9), 73728  }
  0x21   : > { %vm874_vm1 = vcmp.lt.s32.totalorder (!%p741_p9), %v3713_v2, 7  ;;  %v3772_v25 = vadd.s32 (!%p741_p9), 56, %v3713_v2  ;;  %vm841_vm3 = vcmp.lt.s32.totalorder (!%p741_p9), %v3713_v2, 1  ;;  %vm850_vm4 = vcmp.eq.s32.totalorder (!%p741_p9), %v3713_v2, 0  ;;  %s4531_s7 = sld [smem:[#allocation20_spill]] (!%p741_p9)  ;;  %s4534_s6 = sld [smem:[#allocation22_spill]] (!%p741_p9) }
  0x22   : > { %s4535_s29 = sld [smem:[#allocation25_spill]] (!%p741_p9)  ;;  %s4538_s12 = sld [smem:[#allocation26_spill]] (!%p741_p9) }
  0x23   : > { %vm890_vm2 = vcmp.eq.s32.totalorder (!%p741_p9), %v3772_v25, 63 }
  0x24   : > { %v981_v1 = vld [vmem:[%s4524_s3] sm:$0x3f] (!%p741_p9)  ;;  %s4494_s3 = smov (!%p741_p9), 8  }
  0x25   : > { %s812_s5 = scalar_select %p811_p10, %s3681_s9, 1  ;;  %3055 = vmatprep.subr.msk.mxu0 %vm1014_vm0, %v981_v1  ;;  %3348 = vmatprep.subr.msk.mxu1 %vm1014_vm0, %v981_v1 }
  0x26   : > { %3056 = vmatpush3.msk.msra.mxu0 %vm1014_vm0, %v981_v1  ;;  %3349 = vmatpush3.msk.msra.mxu1 %vm1014_vm0, %v981_v1  ;;  %vm1658_vm0 = vcmask 195584  }
  0x27   : > { %s2947_s0 = sshll.u32 %s812_s5, 6  ;;  %s4528_s5 = sld [smem:[#allocation19_spill]] }
  0x28   : > { %s815_s28 = scalar_lea.vmem %s4525_s8, %s2947_s0  ;;  %s3510_s8 = smov 4  }
  0x29   : > { %v3718_v3 = vld [vmem:[%s815_s28 + $0x18] sm:$0xff]  ;;  %v3720_v4 = vld [vmem:[%s815_s28] sm:$0xff]  ;;  %v3722_v5 = vld [vmem:[%s815_s28 + $0x8] sm:$0xff] }
  0x2a   : > { %913 = vrot.lane.b32.xlu1 %v3718_v3, %s3509_s11  ;;  %907 = vrot.lane.b32.xlu0 %v3720_v4, %s3509_s11  ;;  %v866_v6 = vrot.slane %v3720_v4, 1  ;;  %v3730_v7 = vld [vmem:[%s815_s28 + $0x10] sm:$0xff]  ;;  %v867_v8 = vrot.slane %v3722_v5, 1  ;;  %v3734_v10 = vld [vmem:[%s815_s28 + $0x20] sm:$0xff]  ;;  %v869_v13 = vrot.slane %v3718_v3, 1  ;;  %v833_v29 = vrot.slane %v3720_v4, 7 }
  0x2b   : > { %v868_v9 = vrot.slane %v3730_v7, 1  ;;  %v870_v14 = vrot.slane %v3734_v10, 1  ;;  %v3752_v17 = vld [vmem:[%s815_s28 + $0x28] sm:$0xff]  ;;  %v3754_v18 = vld [vmem:[%s815_s28 + $0x30] sm:$0xff]  ;;  %v3760_v21 = vld [vmem:[%s815_s28 + $0x38] sm:$0xff]  ;;  %v834_v34 = vrot.slane %v3722_v5, 7 }
  0x2c   : > { %v881_v11 = vsel %vm874_vm1, %v866_v6, %v867_v8  ;;  %v871_v19 = vrot.slane %v3752_v17, 1  ;;  %v872_v20 = vrot.slane %v3754_v18, 1  ;;  %v873_v24 = vrot.slane %v3760_v21, 1  ;;  %s4533_s28 = sld [smem:[#allocation23_spill]] }
  0x2d   : > { %v880_v12 = vsel %vm874_vm1, %v867_v8, %v868_v9  ;;  %v879_v15 = vsel %vm874_vm1, %v868_v9, %v869_v13  ;;  %v878_v16 = vsel %vm874_vm1, %v869_v13, %v870_v14  ;;  %v840_v30 = vrot.slane %v3760_v21, 7 }
  0x2e   : > { %909 = vrot.lane.b32.xlu0 %v3722_v5, %s3509_s11  ;;  %939 = vrot.lane.b32.xlu1 %v881_v11, %s3510_s8  ;;  %v877_v22 = vsel %vm874_vm1, %v870_v14, %v871_v19  ;;  %v876_v23 = vsel %vm874_vm1, %v871_v19, %v872_v20  ;;  %v882_v26 = vsel %vm874_vm1, %v873_v24, %v866_v6  ;;  %v836_v39 = vrot.slane %v3718_v3, 7 }
  0x2f   : > { %v875_v27 = vsel %vm874_vm1, %v872_v20, %v873_v24  ;;  %v898_v28 = vsel %vm890_vm2, 0.0, %v882_v26  ;;  %v849_v31 = vsel %vm841_vm3, %v840_v30, %v833_v29  ;;  %v835_v40 = vrot.slane %v3730_v7, 7 }
  0x30   : > { %v858_v35 = vsel %vm850_vm4, 0.0, %v849_v31  ;;  %v848_v41 = vsel %vm841_vm3, %v833_v29, %v834_v34  ;;  %v838_v53 = vrot.slane %v3752_v17, 7  ;;  %v837_v56 = vrot.slane %v3734_v10, 7 }
  0x31   : > { %v846_v46 = vsel %vm841_vm3, %v835_v40, %v836_v39  ;;  %v847_v47 = vsel %vm841_vm3, %v834_v34, %v835_v40  ;;  %v839_v8 = vrot.slane %v3754_v18, 7 }
  0x32   : > { %911 = vrot.lane.b32.xlu0 %v3730_v7, %s3509_s11  ;;  %941 = vrot.lane.b32.xlu1 %v880_v12, %s3510_s8  ;;  %v845_v59 = vsel %vm841_vm3, %v836_v39, %v837_v56  ;;  %v844_v60 = vsel %vm841_vm3, %v837_v56, %v838_v53 }
  0x33   : > { %v843_v12 = vsel %vm841_vm3, %v838_v53, %v839_v8  ;;  %v842_v13 = vsel %vm841_vm3, %v839_v8, %v840_v30 }
  0x36   : > { %943 = vrot.lane.b32.xlu0 %v879_v15, %s3510_s8  ;;  %945 = vrot.lane.b32.xlu1 %v878_v16, %s3510_s8 }
  0x3a   : > { %915 = vrot.lane.b32.xlu0 %v3734_v10, %s3509_s11  ;;  %917 = vrot.lane.b32.xlu1 %v3752_v17, %s3509_s11 }
  0x3e   : > { %947 = vrot.lane.b32.xlu0 %v877_v22, %s3510_s8  ;;  %949 = vrot.lane.b32.xlu1 %v876_v23, %s3510_s8  ;;  %v2883_v23 = vld [vmem:[%s4526_s2] ss:$0 sm:$0xff] }
  0x42   : > { %919 = vrot.lane.b32.xlu0 %v3754_v18, %s3509_s11  ;;  %921 = vrot.lane.b32.xlu1 %v3760_v21, %s3509_s11  ;;  %s4529_s11 = sld [smem:[#allocation21_spill]] }
  0x46   : > { %951 = vrot.lane.b32.xlu0 %v875_v27, %s3510_s8  ;;  %953 = vrot.lane.b32.xlu1 %v898_v28, %s3510_s8 }
  0x9c   : > { %v914_v32 = vpop.permute.xlu1 %913  ;;  %v908_v33 = vpop.permute.xlu0 %907 }
  0x9d   : > { %v964_v36 = vsel %vm963_vm5, %v858_v35, %v908_v33  ;;  %v967_v49 = vsel %vm963_vm5, %v846_v46, %v914_v32 }
  0xa0   : > { %v910_v37 = vpop.permute.xlu0 %909  ;;  %v940_v38 = vpop.permute.xlu1 %939 }
  0xa1   : > { %v973_v42 = vsel %vm972_vm6, %v964_v36, %v940_v38  ;;  %v965_v43 = vsel %vm963_vm5, %v848_v41, %v910_v37 }
  0xa2   : > { %3057 = vmatprep.mubr.msk.f32.mxu0 %vm989_vm7, %v973_v42 }
  0xa4   : > { %v912_v44 = vpop.permute.xlu0 %911  ;;  %v942_v45 = vpop.permute.xlu1 %941 }
  0xa5   : > { %v974_v48 = vsel %vm972_vm6, %v965_v43, %v942_v45  ;;  %v966_v50 = vsel %vm963_vm5, %v847_v47, %v912_v44 }
  0xa6   : > { %3058 = vmatmul.mubr.msk.f32.vlgmr.msra.gmra.mrb[0].mxu0 %vm989_vm7, %v974_v48 }
  0xa8   : > { %v944_v51 = vpop.permute.xlu0 %943  ;;  %v946_v52 = vpop.permute.xlu1 %945 }
  0xa9   : > { %v975_v54 = vsel %vm972_vm6, %v966_v50, %v944_v51  ;;  %v976_v55 = vsel %vm972_vm6, %v967_v49, %v946_v52 }
  0xaa   : > { %3060 = vmatprep.mubr.msk.f32.mxu0 %vm989_vm7, %v975_v54  ;;  %v1260_v54 = vld [vmem:[%s4527_s10] sm:$0xff] }
  0xab   : > { %3061 = vmatmul.mubr.msk.f32.gmra.mrb[2].mxu0 %vm989_vm7, %v976_v55  ;;  %v1261_v55 = vld [vmem:[%s4527_s10 + $0x8] sm:$0xf]  ;;  %s4499_s10 = smov 16  }
  0xac   : > { %v916_v57 = vpop.permute.xlu0 %915  ;;  %v918_v58 = vpop.permute.xlu1 %917 }
  0xad   : > { %v968_v61 = vsel %vm963_vm5, %v845_v59, %v916_v57  ;;  %v969_v62 = vsel %vm963_vm5, %v844_v60, %v918_v58  ;;  %v3252_v57 = vpack.c.bf16 %v1261_v55, %v1260_v54 }
  0xaf   : > { %3254 = vmatprep.subr.msk.bf16.mxu1 %vm3253_vm10, %v3252_v57 }
  0xb0   : > { %v948_v63 = vpop.permute.xlu0 %947  ;;  %v950_v0 = vpop.permute.xlu1 %949 }
  0xb1   : > { %v977_v1 = vsel %vm972_vm6, %v968_v61, %v948_v63  ;;  %v978_v6 = vsel %vm972_vm6, %v969_v62, %v950_v0 }
  0xb2   : > { %3063 = vmatprep.mubr.msk.f32.mxu0 %vm989_vm7, %v977_v1 }
  0xb3   : > { %3064 = vmatmul.mubr.msk.f32.gmra.mrb[4].mxu0 %vm989_vm7, %v978_v6 }
  0xb4   : > { %v920_v9 = vpop.permute.xlu0 %919  ;;  %v922_v11 = vpop.permute.xlu1 %921 }
  0xb5   : > { %v970_v14 = vsel %vm963_vm5, %v843_v12, %v920_v9  ;;  %v971_v15 = vsel %vm963_vm5, %v842_v13, %v922_v11 }
  0xb8   : > { %v952_v16 = vpop.permute.xlu0 %951  ;;  %v954_v19 = vpop.permute.xlu1 %953 }
  0xb9   : > { %v980_v20 = vsel %vm972_vm6, %v971_v15, %v954_v19  ;;  %v979_v22 = vsel %vm972_vm6, %v970_v14, %v952_v16 }
  0xba   : > { %3066 = vmatprep.mubr.msk.f32.mxu1 %vm989_vm7, %v979_v22 }
  0xbb   : > { %3067 = vmatmul.mubr.msk.f32.vlgmr.msra.gmra.mrb[0].mxu1 %vm989_vm7, %v980_v20  ;;  %vm2423_vm7 = vcmask 523264  }
  0xbc   : > { %3257 = vmatpush3.bf16.msk.msra.mxu1 %vm3253_vm10, %v3252_v57 }
 0x179   : > { %v3059_v24 = vpop.f32.mrb[0].mxu0 }
 0x17a   : > { %v1090_v26 = vadd.f32 %v3059_v24, %v2883_v23  ;;  %v1084_v27 = vpop.f32.mrb[1].mxu0  ;;  %v1403_v24 = vld [vmem:[%s4528_s5] sm:$0x3]  ;;  %s2944_s5 = sshll.u32 %s3681_s9, 4  ;;  %s3519_s9 = smov [#allocation6]  }
 0x17b   : > { %v1085_v28 = vadd.f32 %v2883_v23, %v1084_v27  ;;  %3085 = vmatprep.subr.msk.mxu1 %vm1427_vm11, %v1403_v24 }
 0x17c   : > { %v1124_v29 = vmax.f32 %v1090_v26, 0.0 }
 0x17d   : > { %v3844_v30 = vmax.f32 %v1085_v28, 0.0 }
 0x17e   : > { %v1132_v31 = vrot.slane %v1124_v29, 7  ;;  %v1156_v32 = vrot.slane %v1124_v29, 1  ;;  %1189 = vrot.lane.b32.xlu1 %v1124_v29, %s3510_s8  ;;  %v3062_v33 = vpop.f32.mrb[2].mxu0 }
 0x17f   : > { %v1131_v34 = vrot.slane %v3844_v30, 7  ;;  %v1155_v35 = vrot.slane %v3844_v30, 1  ;;  %v1100_v36 = vadd.f32 %v3062_v33, %v2883_v23  ;;  %v1094_v37 = vpop.f32.mrb[3].mxu0  ;;  %1187 = vrot.lane.b32.xlu0 %v3844_v30, %s3510_s8 }
 0x180   : > { %v1095_v38 = vadd.f32 %v2883_v23, %v1094_v37 }
 0x181   : > { %v1126_v39 = vmax.f32 %v1100_v36, 0.0  ;;  %v1169_v40 = vsel %vm874_vm1, %v1155_v35, %v1156_v32  ;;  %v3855_v41 = vsel %vm841_vm3, %v1131_v34, %v1132_v31 }
 0x182   : > { %v1125_v42 = vmax.f32 %v1095_v38, 0.0 }
 0x183   : > { %v1134_v43 = vrot.slane %v1126_v39, 7  ;;  %v1158_v44 = vrot.slane %v1126_v39, 1  ;;  %1193 = vrot.lane.b32.xlu1 %v1126_v39, %s3510_s8 }
 0x184   : > { %v1133_v45 = vrot.slane %v1125_v42, 7  ;;  %v1157_v46 = vrot.slane %v1125_v42, 1 }
 0x186   : > { %v3065_v47 = vpop.f32.mrb[4].mxu0  ;;  %v1168_v48 = vsel %vm874_vm1, %v1156_v32, %v1157_v46  ;;  %v1167_v49 = vsel %vm874_vm1, %v1157_v46, %v1158_v44  ;;  %v3864_v50 = vsel %vm841_vm3, %v1133_v45, %v1134_v43  ;;  %v3868_v51 = vsel %vm841_vm3, %v1132_v31, %v1133_v45 }
 0x187   : > { %v1110_v52 = vadd.f32 %v3065_v47, %v2883_v23  ;;  %v1104_v53 = vpop.f32.mrb[5].mxu0  ;;  %1221 = vrot.lane.b32.xlu1 %v1168_v48, %s4494_s3 }
 0x188   : > { %v1105_v56 = vadd.f32 %v2883_v23, %v1104_v53 }
 0x189   : > { %v1128_v58 = vmax.f32 %v1110_v52, 0.0 }
 0x18a   : > { %v1127_v59 = vmax.f32 %v1105_v56, 0.0 }
 0x18b   : > { %v1136_v60 = vrot.slane %v1128_v58, 7  ;;  %v1160_v61 = vrot.slane %v1128_v58, 1  ;;  %1197 = vrot.lane.b32.xlu1 %v1128_v58, %s3510_s8 }
 0x18c   : > { %v1135_v62 = vrot.slane %v1127_v59, 7  ;;  %v1159_v63 = vrot.slane %v1127_v59, 1 }
 0x18e   : > { %v3068_v0 = vpop.f32.mrb[0].mxu1  ;;  %v1166_v1 = vsel %vm874_vm1, %v1158_v44, %v1159_v63  ;;  %v1165_v6 = vsel %vm874_vm1, %v1159_v63, %v1160_v61  ;;  %v3884_v8 = vsel %vm841_vm3, %v1135_v62, %v1136_v60  ;;  %v1142_v9 = vsel %vm841_vm3, %v1134_v43, %v1135_v62 }
 0x18f   : > { %v1120_v11 = vadd.f32 %v3068_v0, %v2883_v23  ;;  %v1114_v12 = vpop.f32.mrb[1].mxu1 }
 0x190   : > { %v1115_v13 = vadd.f32 %v2883_v23, %v1114_v12 }
 0x191   : > { %v1130_v14 = vmax.f32 %v1120_v11, 0.0 }
 0x192   : > { %v1129_v15 = vmax.f32 %v1115_v13, 0.0 }
 0x193   : > { %v1138_v16 = vrot.slane %v1130_v14, 7  ;;  %v1162_v19 = vrot.slane %v1130_v14, 1 }
 0x194   : > { %v1137_v20 = vrot.slane %v1129_v15, 7  ;;  %v1161_v22 = vrot.slane %v1129_v15, 1  ;;  %1199 = vrot.lane.b32.xlu0 %v1129_v15, %s3510_s8 }
 0x195   : > { %v1170_v26 = vsel %vm874_vm1, %v1162_v19, %v1155_v35  ;;  %v1146_v27 = vsel %vm841_vm3, %v1138_v16, %v1131_v34 }
 0x196   : > { %v1164_v23 = vsel %vm874_vm1, %v1160_v61, %v1161_v22  ;;  %v1163_v28 = vsel %vm874_vm1, %v1161_v22, %v1162_v19  ;;  %v1140_v29 = vsel %vm841_vm3, %v1136_v60, %v1137_v20  ;;  %v1139_v30 = vsel %vm841_vm3, %v1137_v20, %v1138_v16 }
 0x197   : > { %1229 = vrot.lane.b32.xlu1 %v1164_v23, %s4494_s3  ;;  %v1178_v31 = vsel %vm890_vm2, 0.0, %v1170_v26  ;;  %v1147_v38 = vsel %vm850_vm4, 0.0, %v1146_v27  ;;  %v1650_v27 = vld [vmem:[%s4529_s11 + $0x10] sm:$0xff] }
 0x198   : > { %1219 = vrot.lane.b32.xlu0 %v1169_v40, %s4494_s3 }
 0x19b   : > { %1225 = vrot.lane.b32.xlu1 %v1166_v1, %s4494_s3 }
 0x19c   : > { %1191 = vrot.lane.b32.xlu0 %v1125_v42, %s3510_s8 }
 0x19f   : > { %1201 = vrot.lane.b32.xlu1 %v1130_v14, %s3510_s8 }
 0x1a0   : > { %1223 = vrot.lane.b32.xlu0 %v1167_v49, %s4494_s3 }
 0x1a3   : > { %1233 = vrot.lane.b32.xlu1 %v1178_v31, %s4494_s3 }
 0x1a4   : > { %1195 = vrot.lane.b32.xlu0 %v1127_v59, %s3510_s8  ;;  %s3518_s8 = smov 64  }
 0x1a8   : > { %1227 = vrot.lane.b32.xlu0 %v1165_v6, %s4494_s3 }
 0x1ac   : > { %1231 = vrot.lane.b32.xlu0 %v1163_v28, %s4494_s3  ;;  %s4530_s3 = sld [smem:[#allocation18_spill]] }
 0x1f0   : > { %v1190_v32 = vpop.permute.xlu1 %1189 }
 0x1f1   : > { %v1188_v35 = vpop.permute.xlu0 %1187  ;;  %v1244_v40 = vsel %vm972_vm6, %v3855_v41, %v1190_v32 }
 0x1f2   : > { %v1243_v25 = vsel %vm972_vm6, %v1147_v38, %v1188_v35 }
 0x1f5   : > { %v1194_v33 = vpop.permute.xlu1 %1193 }
 0x1f6   : > { %v1246_v41 = vsel %vm972_vm6, %v3864_v50, %v1194_v33 }
 0x1f9   : > { %v1222_v34 = vpop.permute.xlu1 %1221 }
 0x1fa   : > { %v1253_v44 = vsel %vm1251_vm12, %v1244_v40, %v1222_v34 }
 0x1fd   : > { %v1198_v37 = vpop.permute.xlu1 %1197 }
 0x206   : > { %v1200_v36 = vpop.permute.xlu0 %1199 }
 0x207   : > { %v1249_v59 = vsel %vm972_vm6, %v1140_v29, %v1200_v36 }
 0x209   : > { %v1230_v42 = vpop.permute.xlu1 %1229 }
 0x20a   : > { %v1220_v39 = vpop.permute.xlu0 %1219 }
 0x20b   : > { %v1252_v43 = vsel %vm1251_vm12, %v1243_v25, %v1220_v39 }
 0x20c   : > { %3073 = vmatprep.mubr.msk.f32.mxu1 %vm1269_vm13, %v1252_v43 }
 0x20d   : > { %3074 = vmatmul.mubr.msk.f32.vlgmr.msra.gmra.mrb[2].mxu1 %vm1269_vm13, %v1253_v44  ;;  %v1226_v46 = vpop.permute.xlu1 %1225 }
 0x20e   : > { %v1192_v45 = vpop.permute.xlu0 %1191  ;;  %3086 = vmatpush3.msk.msra.mxu1 %vm1427_vm11, %v1403_v24  ;;  %v1255_v52 = vsel %vm1251_vm12, %v1246_v41, %v1226_v46 }
 0x20f   : > { %v1245_v47 = vsel %vm972_vm6, %v3868_v51, %v1192_v45  ;;  %v1248_v51 = vsel %vm972_vm6, %v3884_v8, %v1198_v37 }
 0x210   : > { %v1257_v50 = vsel %vm1251_vm12, %v1248_v51, %v1230_v42 }
 0x211   : > { %v1202_v54 = vpop.permute.xlu1 %1201 }
 0x212   : > { %v1224_v48 = vpop.permute.xlu0 %1223  ;;  %v1250_v61 = vsel %vm972_vm6, %v1139_v30, %v1202_v54 }
 0x213   : > { %v1254_v49 = vsel %vm1251_vm12, %v1245_v47, %v1224_v48 }
 0x214   : > { %3076 = vmatprep.mubr.msk.f32.mxu1 %vm1269_vm13, %v1254_v49 }
 0x215   : > { %3077 = vmatmul.mubr.msk.f32.gmra.mrb[4].mxu1 %vm1269_vm13, %v1255_v52  ;;  %v1234_v58 = vpop.permute.xlu1 %1233 }
 0x216   : > { %v1196_v53 = vpop.permute.xlu0 %1195  ;;  %v1259_v63 = vsel %vm1251_vm12, %v1250_v61, %v1234_v58 }
 0x217   : > { %v1247_v55 = vsel %vm972_vm6, %v1142_v9, %v1196_v53  ;;  %v4011_v53 = vadd.s32 24, %v3713_v2  ;;  %vm2101_vm6 = vcmask 392192  }
 0x219   : > { %vm1602_vm14 = vcmp.eq.s32.totalorder %v4011_v53, 31 }
 0x21a   : > { %v1228_v56 = vpop.permute.xlu0 %1227 }
 0x21b   : > { %v1256_v57 = vsel %vm1251_vm12, %v1247_v55, %v1228_v56 }
 0x21c   : > { %3079 = vmatprep.mubr.msk.f32.mxu1 %vm1269_vm13, %v1256_v57 }
 0x21d   : > { %3080 = vmatmul.mubr.msk.f32.gmra.mrb[6].mxu1 %vm1269_vm13, %v1257_v50 }
 0x21e   : > { %v1232_v60 = vpop.permute.xlu0 %1231 }
 0x21f   : > { %v1258_v62 = vsel %vm1251_vm12, %v1249_v59, %v1232_v60 }
 0x220   : > { %3082 = vmatprep.mubr.msk.f32.mxu1 %vm1269_vm13, %v1258_v62 }
 0x221   : > { %3083 = vmatmul.mubr.msk.f32.gmra.mrb[8].mxu1 %vm1269_vm13, %v1259_v63 }
 0x222   : > { %3087 = vmatprep.mubr.msk.f32.mxu1 %vm963_vm5, %v3720_v4  ;;  %v1648_v4 = vld [vmem:[%s4529_s11] sm:$0xff] }
 0x225   : > { %3088 = vmatmul.mubr.msk.f32.vlgmr.msra.gmra.mrb[2].mxu1 %vm963_vm5, %v3722_v5 }
 0x226   : > { %3090 = vmatprep.mubr.msk.f32.mxu1 %vm963_vm5, %v3730_v7  ;;  %v2893_v7 = vld [vmem:[%s4530_s3] ss:$0 sm:$0xff]  ;;  %s4532_s3 = smov 8  }
 0x229   : > { %3091 = vmatmul.mubr.msk.f32.gmra.mrb[4].mxu1 %vm963_vm5, %v3718_v3  ;;  %v1649_v3 = vld [vmem:[%s4529_s11 + $0x8] sm:$0xff]  ;;  %s4536_s11 = smov 16  }
 0x22a   : > { %3093 = vmatprep.mubr.msk.f32.mxu1 %vm963_vm5, %v3734_v10  ;;  %v3258_v5 = vpack.c.bf16 %v1649_v3, %v1648_v4  ;;  %v2903_v10 = vld [vmem:[%s4531_s7] ss:$0 sm:$0xff] }
 0x22c   : > { %3259 = vmatprep.subr.bf16.mxu0 %v3258_v5 }
 0x22d   : > { %3094 = vmatmul.mubr.msk.f32.gmra.mrb[6].mxu1 %vm963_vm5, %v3752_v17  ;;  %3261 = vmatpush3.bf16.msra.mxu0 %v3258_v5 }
 0x22e   : > { %3096 = vmatprep.mubr.msk.f32.mxu1 %vm963_vm5, %v3754_v18  ;;  %3103 = vmatprep.subr.mxu0 %v1650_v27 }
 0x231   : > { %3097 = vmatmul.mubr.msk.f32.gmra.mrb[8].mxu1 %vm963_vm5, %v3760_v21  ;;  %v3356_v21 = vadd.f32 %v2903_v10, %v2893_v7  ;;  %3104 = vmatpush3.msra.mxu0 %v1650_v27  ;;  %vm2085_vm5 = vcmask 261120  }
 0x2f8   : > { %v3089_v17 = vpop.f32.mrb[2].mxu1 }
 0x2f9   : > { %v3350_v18 = vadd.f32 %v3089_v17, %v2893_v7  ;;  %v1497_v0 = vpop.f32.mrb[3].mxu1 }
 0x2fa   : > { %v3352_v1 = vadd.f32 %v2893_v7, %v1497_v0 }
 0x2fb   : > { %v3351_v6 = vadd.f32 %v3350_v18, %v2903_v10 }
 0x2fc   : > { %v3353_v8 = vadd.f32 %v3352_v1, %v2903_v10  ;;  %v3092_v9 = vpop.f32.mrb[4].mxu1 }
 0x2fd   : > { %v1545_v11 = vmax.f32 %v3351_v6, 0.0  ;;  %v3355_v12 = vadd.f32 %v3356_v21, %v3092_v9  ;;  %v1507_v13 = vpop.f32.mrb[5].mxu1 }
 0x2fe   : > { %v1544_v14 = vmax.f32 %v3353_v8, 0.0  ;;  %v3357_v15 = vadd.f32 %v3356_v21, %v1507_v13 }
 0x2ff   : > { %1553 = vst.msk [vmem:[#allocation2 + $0x8] sm:$0xff] %vm1251_vm12, %v1545_v11  ;;  %v1547_v16 = vmax.f32 %v3355_v12, 0.0 }
 0x300   : > { %1552 = vst.msk [vmem:[#allocation2] sm:$0xff] %vm1251_vm12, %v1544_v14  ;;  %v1546_v19 = vmax.f32 %v3357_v15, 0.0  ;;  %v3095_v20 = vpop.f32.mrb[6].mxu1  ;;  %v1824_v15 = vld [vmem:[%s4533_s28] sm:$0xff] }
 0x301   : > { %1555 = vst.msk [vmem:[#allocation2 + $0x18] sm:$0xff] %vm1251_vm12, %v1547_v16  ;;  %v3359_v22 = vadd.f32 %v3356_v21, %v3095_v20  ;;  %v1517_v24 = vpop.f32.mrb[7].mxu1  ;;  %v1825_v16 = vld [vmem:[%s4533_s28 + $0x8] sm:$0xff]  ;;  %v2913_v20 = vld [vmem:[%s4534_s6] ss:$0 sm:$0xff] }
 0x302   : > { %1554 = vst.msk [vmem:[#allocation2 + $0x10] sm:$0xff] %vm1251_vm12, %v1546_v19  ;;  %v3361_v26 = vadd.f32 %v3356_v21, %v1517_v24  ;;  %v3262_v19 = vpack.c.bf16 %v1825_v16, %v1824_v15  ;;  %v1826_v24 = vld [vmem:[%s4533_s28 + $0x10] sm:$0xff] }
 0x303   : > { %v1549_v23 = vmax.f32 %v3359_v22, 0.0 }
 0x304   : > { %v1548_v28 = vmax.f32 %v3361_v26, 0.0  ;;  %v3098_v29 = vpop.f32.mrb[8].mxu1  ;;  %3263 = vmatprep.subr.bf16.mxu0 %v3262_v19 }
 0x305   : > { %1557 = vst.msk [vmem:[#allocation2 + $0x28] sm:$0xff] %vm1251_vm12, %v1549_v23  ;;  %v3363_v30 = vadd.f32 %v3356_v21, %v3098_v29  ;;  %v1527_v31 = vpop.f32.mrb[9].mxu1 }
 0x306   : > { %1556 = vst.msk [vmem:[#allocation2 + $0x20] sm:$0xff] %vm1251_vm12, %v1548_v28  ;;  %v3365_v32 = vadd.f32 %v3356_v21, %v1527_v31 }
 0x307   : > { %v1551_v33 = vmax.f32 %v3363_v30, 0.0  ;;  %v1560_v34 = vld [vmem:[#allocation2] ss:$2 sm:$0xff]  ;;  %v1568_v35 = vld [vmem:[#allocation2 + $0x1] ss:$2 sm:$0xff] }
 0x308   : > { %v1550_v36 = vmax.f32 %v3365_v32, 0.0  ;;  %v3985_v37 = vmax.f32 %v1560_v34, %v1568_v35  ;;  %v1931_v30 = vld [vmem:[%s4535_s29] sm:$0xff]  ;;  %s4502_s29 = smov 32  }
 0x309   : > { %1559 = vst.msk [vmem:[#allocation2 + $0x38] sm:$0xff] %vm1251_vm12, %v1551_v33  ;;  %v1562_v38 = vld [vmem:[#allocation2 + $0x10] ss:$2 sm:$0xff]  ;;  %v1570_v25 = vld [vmem:[#allocation2 + $0x11] ss:$2 sm:$0xff] }
 0x30a   : > { %1558 = vst.msk [vmem:[#allocation2 + $0x30] sm:$0xff] %vm1251_vm12, %v1550_v36  ;;  %1611 = vrot.lane.b32.xlu0 %v3985_v37, %s4532_s3  ;;  %v3991_v39 = vmax.f32 %v1562_v38, %v1570_v25  ;;  %v1591_v40 = vrot.slane %v3985_v37, 1  ;;  %v1579_v50 = vrot.slane %v3985_v37, 7 }
 0x30c   : > { %1613 = vrot.lane.b32.xlu1 %v3991_v39, %s4532_s3  ;;  %v1592_v42 = vrot.slane %v3991_v39, 1  ;;  %v1580_v61 = vrot.slane %v3991_v39, 7 }
 0x30d   : > { %v1564_v43 = vld [vmem:[#allocation2 + $0x20] ss:$2 sm:$0xff]  ;;  %v1572_v44 = vld [vmem:[#allocation2 + $0x21] ss:$2 sm:$0xff] }
 0x30e   : > { %v1597_v45 = vsel %vm874_vm1, %v1591_v40, %v1592_v42  ;;  %v3999_v46 = vmax.f32 %v1564_v43, %v1572_v44  ;;  %v1585_v5 = vsel %vm841_vm3, %v1579_v50, %v1580_v61 }
 0x30f   : > { %1627 = vrot.lane.b32.xlu0 %v1597_v45, %s4499_s10 }
 0x310   : > { %v1593_v47 = vrot.slane %v3999_v46, 1  ;;  %v1581_v7 = vrot.slane %v3999_v46, 7 }
 0x311   : > { %v1566_v48 = vld [vmem:[#allocation2 + $0x30] ss:$2 sm:$0xff]  ;;  %v1574_v41 = vld [vmem:[#allocation2 + $0x31] ss:$2 sm:$0xff] }
 0x312   : > { %v1596_v49 = vsel %vm874_vm1, %v1592_v42, %v1593_v47  ;;  %v4005_v52 = vmax.f32 %v1566_v48, %v1574_v41  ;;  %v1584_v0 = vsel %vm841_vm3, %v1580_v61, %v1581_v7 }
 0x313   : > { %1615 = vrot.lane.b32.xlu0 %v3999_v46, %s4532_s3  ;;  %1629 = vrot.lane.b32.xlu1 %v1596_v49, %s4499_s10 }
 0x314   : > { %v1594_v54 = vrot.slane %v4005_v52, 1  ;;  %v1582_v57 = vrot.slane %v4005_v52, 7 }
 0x316   : > { %v1595_v55 = vsel %vm874_vm1, %v1593_v47, %v1594_v54  ;;  %v1598_v56 = vsel %vm874_vm1, %v1594_v54, %v1591_v40  ;;  %v1586_v59 = vsel %vm841_vm3, %v1582_v57, %v1579_v50  ;;  %v1583_v11 = vsel %vm841_vm3, %v1581_v7, %v1582_v57 }
 0x317   : > { %1617 = vrot.lane.b32.xlu1 %v4005_v52, %s4532_s3  ;;  %1631 = vrot.lane.b32.xlu0 %v1595_v55, %s4499_s10  ;;  %v1606_v51 = vsel %vm1602_vm14, 0.0, %v1598_v56  ;;  %v1587_v60 = vsel %vm850_vm4, 0.0, %v1586_v59 }
 0x31b   : > { %1633 = vrot.lane.b32.xlu1 %v1606_v51, %s4499_s10  ;;  %s4537_s10 = sld [smem:[#allocation24_spill]] }
 0x37c   : > { %v1612_v58 = vpop.permute.xlu0 %1611 }
 0x37d   : > { %v1639_v62 = vsel %vm1251_vm12, %v1587_v60, %v1612_v58 }
 0x37e   : > { %v1614_v63 = vpop.permute.xlu1 %1613 }
 0x37f   : > { %v1640_v10 = vsel %vm1251_vm12, %v1585_v5, %v1614_v63 }
 0x381   : > { %v1628_v4 = vpop.permute.xlu0 %1627 }
 0x382   : > { %v1644_v3 = vsel %vm1643_vm15, %v1639_v62, %v1628_v4 }
 0x383   : > { %3105 = vmatprep.mubr.msk.f32.mxu0 %vm1658_vm0, %v1644_v3 }
 0x385   : > { %v1616_v17 = vpop.permute.xlu0 %1615  ;;  %v1630_v18 = vpop.permute.xlu1 %1629 }
 0x386   : > { %v1645_v21 = vsel %vm1643_vm15, %v1640_v10, %v1630_v18  ;;  %v1641_v1 = vsel %vm1251_vm12, %v1584_v0, %v1616_v17 }
 0x387   : > { %3106 = vmatmul.mubr.msk.f32.vlgmr.msra.gmra.mrb[6].mxu0 %vm1658_vm0, %v1645_v21 }
 0x388   : > { %3265 = vmatpush3.bf16.msra.mxu0 %v3262_v19 }
 0x389   : > { %v1618_v6 = vpop.permute.xlu1 %1617  ;;  %v1632_v8 = vpop.permute.xlu0 %1631  ;;  %3115 = vmatprep.subr.mxu0 %v1826_v24 }
 0x38a   : > { %v1646_v9 = vsel %vm1643_vm15, %v1641_v1, %v1632_v8  ;;  %v1642_v12 = vsel %vm1251_vm12, %v1583_v11, %v1618_v6  ;;  %v2088_v6 = vld [vmem:[%s4473_s13] sm:$0xff]  ;;  %v2089_v8 = vld [vmem:[%s4473_s13 + $0x8] sm:$0xff] }
 0x38b   : > { %3108 = vmatprep.mubr.msk.f32.mxu0 %vm1658_vm0, %v1646_v9  ;;  %v3266_v9 = vpack.c.bf16 %v2089_v8, %v2088_v6  ;;  %v2923_v11 = vld [vmem:[%s4538_s12] ss:$0 sm:$0xff]  ;;  %s4539_s12 = smov 32  }
 0x38c   : > { %3116 = vmatpush3.msra.mxu0 %v1826_v24 }
 0x38d   : > { %v1634_v13 = vpop.permute.xlu1 %1633  ;;  %3123 = vmatprep.subr.mxu0 %v1931_v30  ;;  %3267 = vmatprep.subr.bf16.mxu1 %v3266_v9 }
 0x38e   : > { %v1647_v14 = vsel %vm1643_vm15, %v1642_v12, %v1634_v13  ;;  %3269 = vmatpush3.bf16.msra.mxu1 %v3266_v9 }
 0x38f   : > { %3109 = vmatmul.mubr.msk.f32.gmra.mrb[8].mxu0 %vm1658_vm0, %v1647_v14 }
 0x45a   : > { %v3107_v22 = vpop.f32.mrb[6].mxu0 }
 0x45b   : > { %v1743_v26 = vadd.f32 %v3107_v22, %v2913_v20  ;;  %v1737_v27 = vpop.f32.mrb[7].mxu0 }
 0x45c   : > { %v1738_v23 = vadd.f32 %v2913_v20, %v1737_v27 }
 0x45d   : > { %v1757_v28 = vmax.f32 %v1743_v26, 0.0 }
 0x45e   : > { %v1756_v29 = vmax.f32 %v1738_v23, 0.0  ;;  %v2092_v23 = vld [vmem:[%s4473_s13 + $0x20] sm:$0xff] }
 0x45f   : > { %v1761_v31 = vrot.slane %v1757_v28, 7  ;;  %v1773_v32 = vrot.slane %v1757_v28, 1  ;;  %1790 = vrot.lane.b32.xlu1 %v1757_v28, %s4532_s3  ;;  %v2093_v28 = vld [vmem:[%s4473_s13 + $0x28] sm:$0xff] }
 0x460   : > { %v1760_v33 = vrot.slane %v1756_v29, 7  ;;  %v1772_v34 = vrot.slane %v1756_v29, 1  ;;  %1788 = vrot.lane.b32.xlu0 %v1756_v29, %s4532_s3 }
 0x462   : > { %v3110_v35 = vpop.f32.mrb[8].mxu0  ;;  %v1778_v36 = vsel %vm874_vm1, %v1772_v34, %v1773_v32  ;;  %v1766_v38 = vsel %vm841_vm3, %v1760_v33, %v1761_v31 }
 0x463   : > { %v1753_v25 = vadd.f32 %v3110_v35, %v2913_v20  ;;  %v1747_v40 = vpop.f32.mrb[9].mxu0 }
 0x464   : > { %v1748_v42 = vadd.f32 %v2913_v20, %v1747_v40  ;;  %1804 = vrot.lane.b32.xlu0 %v1778_v36, %s4536_s11 }
 0x465   : > { %v1759_v43 = vmax.f32 %v1753_v25, 0.0 }
 0x466   : > { %v1758_v44 = vmax.f32 %v1748_v42, 0.0 }
 0x467   : > { %v1763_v45 = vrot.slane %v1759_v43, 7  ;;  %v1775_v47 = vrot.slane %v1759_v43, 1  ;;  %1794 = vrot.lane.b32.xlu1 %v1759_v43, %s4532_s3 }
 0x468   : > { %v1762_v48 = vrot.slane %v1758_v44, 7  ;;  %v1774_v41 = vrot.slane %v1758_v44, 1  ;;  %1792 = vrot.lane.b32.xlu0 %v1758_v44, %s4532_s3 }
 0x469   : > { %v1779_v49 = vsel %vm874_vm1, %v1775_v47, %v1772_v34  ;;  %v1767_v54 = vsel %vm841_vm3, %v1763_v45, %v1760_v33 }
 0x46a   : > { %v1777_v55 = vsel %vm874_vm1, %v1773_v32, %v1774_v41  ;;  %v1776_v56 = vsel %vm874_vm1, %v1774_v41, %v1775_v47  ;;  %v1764_v51 = vsel %vm841_vm3, %v1762_v48, %v1763_v45  ;;  %v1765_v57 = vsel %vm841_vm3, %v1761_v31, %v1762_v48 }
 0x46b   : > { %1806 = vrot.lane.b32.xlu1 %v1777_v55, %s4536_s11  ;;  %v1783_v50 = vsel %vm1602_vm14, 0.0, %v1779_v49  ;;  %v1768_v60 = vsel %vm850_vm4, 0.0, %v1767_v54  ;;  %v3274_v31 = vpack.c.bf16 %v2093_v28, %v2092_v23 }
 0x46c   : > { %1808 = vrot.lane.b32.xlu0 %v1776_v56, %s4536_s11 }
 0x46f   : > { %1810 = vrot.lane.b32.xlu1 %v1783_v50, %s4536_s11 }
 0x4d1   : > { %v1791_v59 = vpop.permute.xlu1 %1790 }
 0x4d2   : > { %v1789_v58 = vpop.permute.xlu0 %1788  ;;  %v1817_v5 = vsel %vm1251_vm12, %v1766_v38, %v1791_v59  ;;  %v4145_v38 = vadd.s32 8, %v3713_v2 }
 0x4d3   : > { %v1816_v61 = vsel %vm1251_vm12, %v1768_v60, %v1789_v58 }
 0x4d4   : > { %vm2064_vm2 = vcmp.eq.s32.totalorder %v4145_v38, 15  ;;  %v3515_v38 = vmov 0.0|0.0  }
 0x4d6   : > { %v1805_v62 = vpop.permute.xlu0 %1804 }
 0x4d7   : > { %v1820_v63 = vsel %vm1643_vm15, %v1816_v61, %v1805_v62 }
 0x4d8   : > { %3117 = vmatprep.mubr.msk.f32.mxu0 %vm1658_vm0, %v1820_v63  ;;  %v2217_v63 = vld [vmem:[%s4475_s15] sm:$0xff] }
 0x4d9   : > { %v1795_v4 = vpop.permute.xlu1 %1794 }
 0x4da   : > { %v1793_v3 = vpop.permute.xlu0 %1792  ;;  %v1819_v21 = vsel %vm1251_vm12, %v1764_v51, %v1795_v4  ;;  %v2218_v4 = vld [vmem:[%s4475_s15 + $0x8] sm:$0xff] }
 0x4db   : > { %v1818_v7 = vsel %vm1251_vm12, %v1765_v57, %v1793_v3  ;;  %v2219_v3 = vld [vmem:[%s4475_s15 + $0x10] sm:$0xff] }
 0x4dd   : > { %v1807_v53 = vpop.permute.xlu1 %1806 }
 0x4de   : > { %v1821_v10 = vsel %vm1643_vm15, %v1817_v5, %v1807_v53  ;;  %v1809_v17 = vpop.permute.xlu0 %1808  ;;  %v3278_v5 = vpack.c.bf16 %v2218_v4, %v2217_v63  ;;  %v2220_v53 = vld [vmem:[%s4475_s15 + $0x18] sm:$0xff] }
 0x4df   : > { %v1822_v18 = vsel %vm1643_vm15, %v1818_v7, %v1809_v17  ;;  %3118 = vmatmul.mubr.msk.f32.vlgmr.msra.gmra.mrb[10].mxu0 %vm1658_vm0, %v1821_v10  ;;  %v3282_v7 = vpack.c.bf16 %v2220_v53, %v2219_v3  ;;  %v2221_v10 = vld [vmem:[%s4475_s15 + $0x20] sm:$0xff]  ;;  %v2222_v17 = vld [vmem:[%s4475_s15 + $0x28] sm:$0xff] }
 0x4e0   : > { %3124 = vmatpush3.msra.mxu0 %v1931_v30  ;;  %3120 = vmatprep.mubr.msk.f32.mxu0 %vm1658_vm0, %v1822_v18  ;;  %v3286_v18 = vpack.c.bf16 %v2222_v17, %v2221_v10 }
 0x4e1   : > { %v1811_v0 = vpop.permute.xlu1 %1810  ;;  %3279 = vmatprep.subr.bf16.mxu0 %v3278_v5 }
 0x4e2   : > { %v1823_v1 = vsel %vm1643_vm15, %v1819_v21, %v1811_v0  ;;  %v2928_v21 = vld [vmem:[%s4474_s14] ss:$0 sm:$0xff] }
 0x4e3   : > { %3121 = vmatmul.mubr.msk.f32.gmra.mrb[12].mxu0 %vm1658_vm0, %v1823_v1  ;;  %v2311_v0 = vld [vmem:[%s4477_s17] sm:$0xff]  ;;  %v2312_v1 = vld [vmem:[%s4477_s17 + $0x8] sm:$0xff] }
 0x4e4   : > { %3125 = vmatprep.mubr.msk.f32.mxu0 %vm1251_vm12, %v3985_v37  ;;  %v2090_v37 = vld [vmem:[%s4473_s13 + $0x10] sm:$0xff]  ;;  %v3290_v6 = vpack.c.bf16 %v2312_v1, %v2311_v0 }
 0x4e7   : > { %3126 = vmatmul.mubr.msk.f32.vlgmr.msra.gmra.mrb[10].mxu0 %vm1251_vm12, %v3991_v39  ;;  %v2091_v39 = vld [vmem:[%s4473_s13 + $0x18] sm:$0xff] }
 0x4e8   : > { %3128 = vmatprep.mubr.msk.f32.mxu0 %vm1251_vm12, %v3999_v46  ;;  %v3270_v46 = vpack.c.bf16 %v2091_v39, %v2090_v37  ;;  %3281 = vmatpush3.bf16.msra.mxu0 %v3278_v5  ;;  %v3517_v5 = vmov 0.0  }
 0x4e9   : > { %3283 = vmatprep.subr.bf16.mxu0 %v3282_v7 }
 0x4ea   : > { %3271 = vmatprep.subr.bf16.mxu1 %v3270_v46 }
 0x4eb   : > { %3129 = vmatmul.mubr.msk.f32.gmra.mrb[12].mxu0 %vm1251_vm12, %v4005_v52  ;;  %3273 = vmatpush3.bf16.msra.mxu1 %v3270_v46  ;;  %v2918_v52 = vld [vmem:[%s4537_s10] ss:$0 sm:$0xff]  ;;  %s3449_s10 = sshll.u32 %s3519_s9, 4  ;;  %s3450_s10 = int_to_ptr.vmem [resolvable:$false] %s3449_s10 }
 0x4ec   : > { %v3372_v15 = vadd.f32 %v2923_v11, %v2918_v52  ;;  %3275 = vmatprep.subr.bf16.mxu1 %v3274_v31  ;;  %3285 = vmatpush3.bf16.msra.mxu0 %v3282_v7  ;;  %s3451_s2 = scalar_lea.vmem %s3450_s10, 32 }
 0x4ed   : > { %3287 = vmatprep.subr.bf16.mxu0 %v3286_v18 }
 0x4ef   : > { %3277 = vmatpush3.bf16.msra.mxu1 %v3274_v31 }
 0x4f0   : > { %3289 = vmatpush3.bf16.msra.mxu0 %v3286_v18  ;;  %3294 = vmatprep.subr.bf16.mxu1 %v3515_v38 }
 0x4f1   : > { %3291 = vmatprep.subr.bf16.mxu0 %v3290_v6 }
 0x5ba   : > { %v3127_v12 = vpop.f32.mrb[10].mxu0 }
 0x5bb   : > { %v3366_v13 = vadd.f32 %v3127_v12, %v2918_v52  ;;  %v2013_v14 = vpop.f32.mrb[11].mxu0 }
 0x5bc   : > { %v3368_v16 = vadd.f32 %v2918_v52, %v2013_v14 }
 0x5bd   : > { %v3367_v19 = vadd.f32 %v3366_v13, %v2923_v11 }
 0x5be   : > { %v3369_v20 = vadd.f32 %v3368_v16, %v2923_v11  ;;  %v3130_v22 = vpop.f32.mrb[12].mxu0 }
 0x5bf   : > { %v2037_v24 = vmax.f32 %v3367_v19, 0.0  ;;  %v3371_v26 = vadd.f32 %v3372_v15, %v3130_v22  ;;  %v2023_v27 = vpop.f32.mrb[13].mxu0 }
 0x5c0   : > { %v2036_v29 = vmax.f32 %v3369_v20, 0.0  ;;  %v3373_v30 = vadd.f32 %v3372_v15, %v2023_v27 }
 0x5c1   : > { %2041 = vst.msk [vmem:[#allocation3 + $0x8] sm:$0xff] %vm1643_vm15, %v2037_v24  ;;  %v2039_v32 = vmax.f32 %v3371_v26, 0.0 }
 0x5c2   : > { %2040 = vst.msk [vmem:[#allocation3] sm:$0xff] %vm1643_vm15, %v2036_v29  ;;  %v2038_v33 = vmax.f32 %v3373_v30, 0.0 }
 0x5c3   : > { %2043 = vst.msk [vmem:[#allocation3 + $0x18] sm:$0xff] %vm1643_vm15, %v2039_v32 }
 0x5c4   : > { %2042 = vst.msk [vmem:[#allocation3 + $0x10] sm:$0xff] %vm1643_vm15, %v2038_v33  ;;  %v2425_v33 = vld [vmem:[%s4479_s19] sm:$0xff] }
 0x5c9   : > { %v2044_v34 = vld [vmem:[#allocation3] ss:$2 sm:$0xff]  ;;  %v2048_v35 = vld [vmem:[#allocation3 + $0x1] ss:$2 sm:$0xff] }
 0x5ca   : > { %v4142_v36 = vmax.f32 %v2044_v34, %v2048_v35  ;;  %v2426_v34 = vld [vmem:[%s4479_s19 + $0x8] sm:$0xff]  ;;  %v2427_v35 = vld [vmem:[%s4479_s19 + $0x10] sm:$0xff] }
 0x5cb   : > { %v2046_v25 = vld [vmem:[#allocation3 + $0x10] ss:$2 sm:$0xff]  ;;  %v2050_v40 = vld [vmem:[#allocation3 + $0x11] ss:$2 sm:$0xff] }
 0x5cc   : > { %2069 = vrot.lane.b32.xlu0 %v4142_v36, %s4536_s11  ;;  %v4149_v42 = vmax.f32 %v2046_v25, %v2050_v40  ;;  %v2059_v43 = vrot.slane %v4142_v36, 1  ;;  %v2053_v49 = vrot.slane %v4142_v36, 7  ;;  %v3295_v25 = vpack.c.bf16 %v2426_v34, %v2425_v33 }
 0x5ce   : > { %2071 = vrot.lane.b32.xlu1 %v4149_v42, %s4536_s11  ;;  %v2060_v44 = vrot.slane %v4149_v42, 1  ;;  %v2054_v41 = vrot.slane %v4149_v42, 7 }
 0x5d0   : > { %v2061_v45 = vsel %vm874_vm1, %v2059_v43, %v2060_v44  ;;  %v2062_v47 = vsel %vm874_vm1, %v2060_v44, %v2059_v43  ;;  %v2056_v55 = vsel %vm841_vm3, %v2054_v41, %v2053_v49  ;;  %v2055_v50 = vsel %vm841_vm3, %v2053_v49, %v2054_v41  ;;  %v2430_v43 = vld [vmem:[%s4479_s19 + $0x28] sm:$0xff]  ;;  %v2433_v41 = vld [vmem:[%s4479_s19 + $0x40] sm:$0xff] }
 0x5d1   : > { %2077 = vrot.lane.b32.xlu0 %v2061_v45, %s4502_s29  ;;  %v2066_v48 = vsel %vm2064_vm2, 0.0, %v2062_v47  ;;  %v2057_v51 = vsel %vm850_vm4, 0.0, %v2056_v55  ;;  %v2431_v45 = vld [vmem:[%s4479_s19 + $0x30] sm:$0xff]  ;;  %v2432_v47 = vld [vmem:[%s4479_s19 + $0x38] sm:$0xff]  ;;  %v2434_v49 = vld [vmem:[%s4479_s19 + $0x48] sm:$0xff] }
 0x5d2   : > { %2079 = vrot.lane.b32.xlu1 %v2066_v48, %s4502_s29  ;;  %v3304_v48 = vpack.c.bf16 %v2432_v47, %v2431_v45  ;;  %v2931_v55 = vld [vmem:[%s4476_s16] ss:$0 sm:$0xff]  ;;  %s4418_s29 = scalar_lea.hbm %s4487_s27, %s2944_s5 }
 0x63e   : > { %v2070_v54 = vpop.permute.xlu0 %2069 }
 0x63f   : > { %v2083_v57 = vsel %vm1643_vm15, %v2057_v51, %v2070_v54  ;;  %v3307_v54 = vpack.c.bf16 %v2434_v49, %v2433_v41  ;;  %v2934_v51 = vld [vmem:[%s4478_s18] ss:$0 sm:$0xff]  ;;  %v2628_v41 = vld [vmem:[%s4483_s23 + $0x18] sm:$0xff] }
 0x640   : > { %v2072_v56 = vpop.permute.xlu1 %2071 }
 0x641   : > { %v2084_v59 = vsel %vm1643_vm15, %v2055_v50, %v2072_v56 }
 0x643   : > { %v2078_v58 = vpop.permute.xlu0 %2077 }
 0x644   : > { %v2086_v60 = vsel %vm2085_vm5, %v2083_v57, %v2078_v58  ;;  %v2080_v61 = vpop.permute.xlu1 %2079 }
 0x645   : > { %v2087_v62 = vsel %vm2085_vm5, %v2084_v59, %v2080_v61  ;;  %3143 = vmatprep.mubr.msk.f32.mxu1 %vm2101_vm6, %v2086_v60  ;;  %v2435_v61 = vld [vmem:[%s4479_s19 + $0x50] sm:$0xff] }
 0x646   : > { %3144 = vmatmul.mubr.msk.f32.vlgmr.msra.gmra.mrb[10].mxu1 %vm2101_vm6, %v2087_v62  ;;  %v2436_v62 = vld [vmem:[%s4479_s19 + $0x58] sm:$0xff] }
 0x647   : > { %3296 = vmatpush3.bf16.msra.mxu1 %v3295_v25  ;;  %v3310_v4 = vpack.c.bf16 %v2436_v62, %v2435_v61  ;;  %v2731_v61 = vld [vmem:[%s4485_s25 + $0x30] sm:$0xff]  ;;  %v2732_v62 = vld [vmem:[%s4485_s25 + $0x38] sm:$0xff] }
 0x648   : > { %3297 = vmatprep.subr.bf16.mxu1 %v3515_v38 }
 0x719   : > { %v3145_v8 = vpop.f32.mrb[10].mxu1 }
 0x71a   : > { %v2180_v37 = vadd.f32 %v3145_v8, %v2928_v21  ;;  %v2174_v9 = vpop.f32.mrb[11].mxu1 }
 0x71b   : > { %v2175_v39 = vadd.f32 %v2928_v21, %v2174_v9  ;;  %v2533_v9 = vld [vmem:[%s4481_s21] sm:$0xff] }
 0x71c   : > { %v2184_v46 = vmax.f32 %v2180_v37, 0.0 }
 0x71d   : > { %v2183_v52 = vmax.f32 %v2175_v39, 0.0  ;;  %v2534_v39 = vld [vmem:[%s4481_s21 + $0x8] sm:$0xff] }
 0x71e   : > { %v2186_v11 = vrot.slane %v2184_v46, 7  ;;  %v2192_v12 = vrot.slane %v2184_v46, 1  ;;  %2201 = vrot.lane.b32.xlu1 %v2184_v46, %s4536_s11  ;;  %v2535_v46 = vld [vmem:[%s4481_s21 + $0x10] sm:$0xff] }
 0x71f   : > { %v2185_v13 = vrot.slane %v2183_v52, 7  ;;  %v2191_v14 = vrot.slane %v2183_v52, 1  ;;  %2199 = vrot.lane.b32.xlu0 %v2183_v52, %s4536_s11  ;;  %v3313_v52 = vpack.c.bf16 %v2534_v39, %v2533_v9 }
 0x721   : > { %v2194_v15 = vsel %vm874_vm1, %v2192_v12, %v2191_v14  ;;  %v2193_v16 = vsel %vm874_vm1, %v2191_v14, %v2192_v12  ;;  %v2187_v19 = vsel %vm841_vm3, %v2185_v13, %v2186_v11  ;;  %v2188_v20 = vsel %vm841_vm3, %v2186_v11, %v2185_v13  ;;  %v2536_v11 = vld [vmem:[%s4481_s21 + $0x18] sm:$0xff]  ;;  %v2537_v13 = vld [vmem:[%s4481_s21 + $0x20] sm:$0xff]  ;;  %v2538_v14 = vld [vmem:[%s4481_s21 + $0x28] sm:$0xff] }
 0x722   : > { %v2196_v22 = vsel %vm2064_vm2, 0.0, %v2194_v15  ;;  %v2189_v27 = vsel %vm850_vm4, 0.0, %v2188_v20  ;;  %vm3516_vm1 = vmmov 0   ;;  %vm2412_vm3 = vcmp.eq.s32.totalorder %v3713_v2, 7  ;;  %v2725_v2 = vld [vmem:[%s4485_s25] sm:$0xff] }
 0x723   : > { %2209 = vrot.lane.b32.xlu1 %v2196_v22, %s4539_s12  ;;  %2207 = vrot.lane.b32.xlu0 %v2193_v16, %s4539_s12  ;;  %v3316_v12 = vpack.c.bf16 %v2536_v11, %v2535_v46  ;;  %v3319_v15 = vpack.c.bf16 %v2538_v14, %v2537_v13  ;;  %v2539_v16 = vld [vmem:[%s4481_s21 + $0x30] sm:$0xff]  ;;  %v2541_v22 = vld [vmem:[%s4481_s21 + $0x40] sm:$0xff] }
 0x724   : > { %3192 = vmatprep.mubr.msk.f32.mxu1 %vm3516_vm1, %v3517_v5 }
 0x790   : > { %v2202_v24 = vpop.permute.xlu1 %2201 }
 0x791   : > { %v2200_v26 = vpop.permute.xlu0 %2199  ;;  %v2214_v23 = vsel %vm1643_vm15, %v2187_v19, %v2202_v24  ;;  %v2540_v19 = vld [vmem:[%s4481_s21 + $0x38] sm:$0xff]  ;;  %v2542_v24 = vld [vmem:[%s4481_s21 + $0x48] sm:$0xff] }
 0x792   : > { %v2213_v28 = vsel %vm1643_vm15, %v2189_v27, %v2200_v26  ;;  %v3322_v20 = vpack.c.bf16 %v2540_v19, %v2539_v16  ;;  %v3325_v26 = vpack.c.bf16 %v2542_v24, %v2541_v22  ;;  %v2543_v27 = vld [vmem:[%s4481_s21 + $0x50] sm:$0xff] }
 0x795   : > { %v2210_v29 = vpop.permute.xlu1 %2209  ;;  %v2208_v30 = vpop.permute.xlu0 %2207 }
 0x796   : > { %v2216_v31 = vsel %vm2085_vm5, %v2214_v23, %v2210_v29  ;;  %v2215_v32 = vsel %vm2085_vm5, %v2213_v28, %v2208_v30  ;;  %v2544_v23 = vld [vmem:[%s4481_s21 + $0x58] sm:$0xff]  ;;  %v2937_v29 = vld [vmem:[%s4480_s20] ss:$0 sm:$0xff] }
 0x797   : > { %3158 = vmatprep.mubr.msk.f32.mxu0 %vm2101_vm6, %v2215_v32  ;;  %v3328_v28 = vpack.c.bf16 %v2544_v23, %v2543_v27 }
 0x798   : > { %3159 = vmatmul.mubr.msk.f32.vlgmr.msra.gmra.mrb[14].mxu0 %vm2101_vm6, %v2216_v31 }
 0x799   : > { %3293 = vmatpush3.bf16.msra.mxu0 %v3290_v6  ;;  %3165 = vmatprep.mubr.msk.f32.mxu0 %vm1643_vm15, %v4142_v36  ;;  %v2428_v36 = vld [vmem:[%s4479_s19 + $0x18] sm:$0xff] }
 0x79a   : > { %3312 = vmatprep.subr.bf16.mxu0 %v3515_v38  ;;  %v3298_v40 = vpack.c.bf16 %v2428_v36, %v2427_v35  ;;  %v2625_v36 = vld [vmem:[%s4483_s23] sm:$0xff] }
 0x79c   : > { %3299 = vmatpush3.bf16.msra.mxu1 %v3298_v40  ;;  %v2626_v40 = vld [vmem:[%s4483_s23 + $0x8] sm:$0xff] }
 0x79d   : > { %3300 = vmatprep.subr.bf16.mxu1 %v3515_v38 }
 0x7a0   : > { %3166 = vmatmul.mubr.msk.f32.vlgmr.msra.gmra.mrb[14].mxu0 %vm1643_vm15, %v4149_v42  ;;  %v2429_v42 = vld [vmem:[%s4479_s19 + $0x20] sm:$0xff] }
 0x7a1   : > { %v3301_v44 = vpack.c.bf16 %v2430_v43, %v2429_v42  ;;  %3219 = vmatprep.mubr.msk.f32.mxu0 %vm3516_vm1, %v3517_v5  ;;  %3314 = vmatpush3.bf16.msra.mxu0 %v3313_v52  ;;  %v2733_v52 = vld [vmem:[%s4486_s26] sm:$0x1] }
 0x7a2   : > { %3315 = vmatprep.subr.bf16.mxu0 %v3515_v38 }
 0x7a3   : > { %3302 = vmatpush3.bf16.msra.mxu1 %v3301_v44  ;;  %v3331_v44 = vpack.c.bf16 %v2626_v40, %v2625_v36 }
 0x7a4   : > { %3303 = vmatprep.subr.bf16.mxu1 %v3515_v38 }
 0x7a5   : > { %3317 = vmatpush3.bf16.msra.mxu0 %v3316_v12 }
 0x7a6   : > { %3318 = vmatprep.subr.bf16.mxu0 %v3515_v38 }
 0x7a7   : > { %3305 = vmatpush3.bf16.msra.mxu1 %v3304_v48  ;;  %v2627_v48 = vld [vmem:[%s4483_s23 + $0x10] sm:$0xff] }
 0x7a8   : > { %3306 = vmatprep.subr.bf16.mxu1 %v3515_v38 }
 0x7a9   : > { %3320 = vmatpush3.bf16.msra.mxu0 %v3319_v15 }
 0x7aa   : > { %3321 = vmatprep.subr.bf16.mxu0 %v3515_v38 }
 0x7ab   : > { %3308 = vmatpush3.bf16.msra.mxu1 %v3307_v54  ;;  %v3334_v54 = vpack.c.bf16 %v2628_v41, %v2627_v48 }
 0x7ac   : > { %3309 = vmatprep.subr.bf16.mxu1 %v3515_v38 }
 0x7ad   : > { %3323 = vmatpush3.bf16.msra.mxu0 %v3322_v20 }
 0x7ae   : > { %3324 = vmatprep.subr.bf16.mxu0 %v3515_v38 }
 0x7af   : > { %3311 = vmatpush3.bf16.msra.mxu1 %v3310_v4  ;;  %v2939_v4 = vld [vmem:[%s4482_s22] ss:$0 sm:$0xff] }
 0x7b0   : > { %3336 = vmatprep.subr.bf16.mxu1 %v3515_v38 }
 0x7b1   : > { %3326 = vmatpush3.bf16.msra.mxu0 %v3325_v26 }
 0x7b2   : > { %3327 = vmatprep.subr.bf16.mxu0 %v3515_v38 }
 0x7b5   : > { %3329 = vmatpush3.bf16.msra.mxu0 %v3328_v28 }
 0x7b6   : > { %3330 = vmatprep.subr.bf16.mxu0 %v3515_v38 }
 0x873   : > { %v3167_v56 = vpop.f32.mrb[14].mxu0 }
 0x874   : > { %v3374_v57 = vadd.f32 %v3167_v56, %v2931_v55  ;;  %v2390_v50 = vpop.f32.mrb[15].mxu0  ;;  %v2727_v56 = vld [vmem:[%s4485_s25 + $0x10] sm:$0xff] }
 0x875   : > { %v3376_v58 = vadd.f32 %v2931_v55, %v2390_v50  ;;  %v2726_v55 = vld [vmem:[%s4485_s25 + $0x8] sm:$0xff] }
 0x876   : > { %v3375_v59 = vadd.f32 %v3374_v57, %v2934_v51  ;;  %v2728_v57 = vld [vmem:[%s4485_s25 + $0x18] sm:$0xff] }
 0x877   : > { %v3377_v60 = vadd.f32 %v3376_v58, %v2934_v51  ;;  %v3337_v51 = vpack.c.bf16 %v2726_v55, %v2725_v2  ;;  %v3340_v50 = vpack.c.bf16 %v2728_v57, %v2727_v56  ;;  %v2729_v58 = vld [vmem:[%s4485_s25 + $0x20] sm:$0xff] }
 0x878   : > { %v2402_v63 = vmax.f32 %v3375_v59, 0.0  ;;  %v2730_v59 = vld [vmem:[%s4485_s25 + $0x28] sm:$0xff] }
 0x879   : > { %v2401_v3 = vmax.f32 %v3377_v60, 0.0  ;;  %v3343_v60 = vpack.c.bf16 %v2730_v59, %v2729_v58 }
 0x87a   : > { %2404 = vst.msk [vmem:[#allocation4 + $0x8] sm:$0xff] %vm2085_vm5, %v2402_v63  ;;  %v3346_v63 = vpack.c.bf16 %v2732_v62, %v2731_v61 }
 0x87b   : > { %2403 = vst.msk [vmem:[#allocation4] sm:$0xff] %vm2085_vm5, %v2401_v3  ;;  %v2941_v3 = vld [vmem:[%s4484_s24] ss:$0 sm:$0xff] }
 0x882   : > { %v2405_v53 = vld [vmem:[#allocation4] ss:$2 sm:$0xff]  ;;  %v2407_v7 = vld [vmem:[#allocation4 + $0x1] ss:$2 sm:$0xff] }
 0x883   : > { %v4287_v10 = vmax.f32 %v2405_v53, %v2407_v7 }
 0x885   : > { %2415 = vrot.lane.b32.xlu0 %v4287_v10, %s4539_s12  ;;  %v2411_v17 = vrot.slane %v4287_v10, 1  ;;  %v2409_v21 = vrot.slane %v4287_v10, 7 }
 0x887   : > { %v2413_v18 = vsel %vm2412_vm3, 0.0, %v2411_v17  ;;  %v2410_v1 = vsel %vm850_vm4, 0.0, %v2409_v21 }
 0x888   : > { %2419 = vrot.lane.b32.xlu1 %v2413_v18, %s3518_s8 }
 0x8f7   : > { %v2416_v0 = vpop.permute.xlu0 %2415 }
 0x8f8   : > { %v2422_v6 = vsel %vm2085_vm5, %v2410_v1, %v2416_v0 }
 0x8fa   : > { %v2420_v8 = vpop.permute.xlu1 %2419 }
 0x8fb   : > { %v2424_v37 = vsel %vm2423_vm7, %v2422_v6, %v2420_v8 }
 0x8fc   : > { %3193 = vmatmul.mubr.msk.f32.vlgmr.msra.gmra.mrb[12].mxu1 %vm2444_vm8, %v2424_v37 }
 0x8fd   : > { %3249 = vmatprep.mubr.msk.f32.mxu1 %vm3516_vm1, %v3517_v5  ;;  %3338 = vmatpush3.bf16.msra.mxu1 %v3337_v51 }
 0x8fe   : > { %3339 = vmatprep.subr.bf16.mxu1 %v3515_v38 }
 0x901   : > { %3341 = vmatpush3.bf16.msra.mxu1 %v3340_v50 }
 0x902   : > { %3342 = vmatprep.subr.bf16.mxu1 %v3515_v38 }
 0x905   : > { %3344 = vmatpush3.bf16.msra.mxu1 %v3343_v60 }
 0x906   : > { %3345 = vmatprep.subr.bf16.mxu1 %v3515_v38 }
 0x909   : > { %3347 = vmatpush3.bf16.msra.mxu1 %v3346_v63 }
 0x9cf   : > { %v2514_v30 = vpop.f32.mrb[12].mxu1 }
 0x9d0   : > { %v2515_v31 = vadd.f32 %v2937_v29, %v2514_v30  ;;  %v3194_v32 = vpop.f32.mrb[13].mxu1 }
 0x9d2   : > { %v2518_v33 = vmax.f32 %v2515_v31, 0.0 }
 0x9d4   : > { %2524 = vrot.lane.b32.xlu0 %v2518_v33, %s4539_s12  ;;  %v2521_v34 = vrot.slane %v2518_v33, 1  ;;  %v2519_v25 = vrot.slane %v2518_v33, 7 }
 0x9d6   : > { %v2522_v35 = vsel %vm2412_vm3, 0.0, %v2521_v34  ;;  %v2520_v43 = vsel %vm850_vm4, 0.0, %v2519_v25  ;;  %vm2715_vm4 = vcmask 519168  }
 0x9d7   : > { %2528 = vrot.lane.b32.xlu1 %v2522_v35, %s3518_s8  ;;  %s809_s8 = sand.u32 1, %s3499_s4  }
 0x9d8   : > { %s810_s7 = scalar_lea.vmem [#allocation6], %s809_s8  ;;  %s2810_s12 = scalar_lea.sflag [#allocation7], %s809_s8 }
 0x9d9   : > { %s2822_s6 = sshll.u32 %s810_s7, 4  ;;  %s4420_s6 = int_to_ptr.vmem [resolvable:$true] %s2822_s6 }
 0x9da   : > { %s3445_s3 = scalar_lea.vmem %s4420_s6, 16  ;;  %p3452_p0 = scmp.lt.s32.totalorder %s4420_s6, %s3450_s10 }
 0x9db   : > { %p3446_p11 = scmp.ne.s32.totalorder %s4420_s6, %s3445_s3  ;;  %p3453_p1 = scmp.lt.s32.totalorder %s3451_s2, %s3445_s3 }
 0x9dd   : > { %p3447_p12 = pnand %p3446_p11, %p3698_p5  ;;  %p3454_p2 = por %p3453_p1, %p3452_p0 }
 0x9df   : > { %p3448_p13 = pneg %p3447_p12 }
 0x9e1   : > { %p3455_p3 = pnand %p3454_p2, %p3448_p13 }
 0xa46   : > { %v2525_v42 = vpop.permute.xlu0 %2524 }
 0xa47   : > { %v2531_v45 = vsel %vm2085_vm5, %v2520_v43, %v2525_v42 }
 0xa49   : > { %v2529_v47 = vpop.permute.xlu1 %2528 }
 0xa4a   : > { %v2532_v49 = vsel %vm2423_vm7, %v2531_v45, %v2529_v47 }
 0xa4b   : > { %3220 = vmatmul.mubr.msk.f32.vlgmr.msra.gmra.mrb[16].mxu0 %vm2444_vm8, %v2532_v49 }
 0xa4c   : > { %3332 = vmatpush3.bf16.msra.mxu0 %v3331_v44  ;;  %3230 = vmatprep.mubr.msk.f32.mxu0 %vm3516_vm1, %v3517_v5  ;;  %v3378_v5 = vadd.f32 %v2941_v3, %v2939_v4 }
 0xa4d   : > { %3333 = vmatprep.subr.bf16.mxu0 %v3515_v38 }
 0xa50   : > { %3335 = vmatpush3.bf16.msra.mxu0 %v3334_v54 }
 0xa53   : > { %3231 = vmatmul.mubr.msk.f32.vlgmr.msra.gmra.mrb[16].mxu0 %vm2085_vm5, %v4287_v10 }
 0xb26   : > { %v2704_v53 = vpop.f32.mrb[16].mxu0 }
 0xb27   : > { %v3379_v7 = vadd.f32 %v3378_v5, %v2704_v53  ;;  %v3232_v10 = vpop.f32.mrb[17].mxu0 }
 0xb29   : > { %v2709_v17 = vmax.f32 %v3379_v7, 0.0 }
 0xb2b   : > { %2710 = vst.msk [vmem:[#allocation5] sm:$0xff] %vm2423_vm7, %v2709_v17 }
 0xb32   : > { %v2711_v38 = vld [vmem:[#allocation5] ss:$2 sm:$0xf]  ;;  %v2713_v18 = vld [vmem:[#allocation5 + $0x1] ss:$2 sm:$0xf] }
 0xb33   : > { %v2714_v21 = vmax.f32 %v2711_v38, %v2713_v18 }
 0xb35   : > { %v2716_v0 = vsel %vm2715_vm4, %v2714_v21, 0.0 }
 0xb36   : > { %v2717_v1 = vrot.slane %v2716_v0, 4 }
 0xb38   : > { %v2718_v6 = vadd.f32 %v2717_v1, %v2716_v0 }
 0xb3a   : > { %v2719_v8 = vrot.slane %v2718_v6, 2 }
 0xb3c   : > { %v2720_v37 = vadd.f32 %v2719_v8, %v2718_v6 }
 0xb3e   : > { %v2721_v9 = vrot.slane %v2720_v37, 1 }
 0xb40   : > { %v2722_v39 = vadd.f32 %v2721_v9, %v2720_v37 }
 0xb42   : > { %v2724_v46 = vmul.f32 0.25, %v2722_v39 }
 0xb44   : > { %3250 = vmatmul.mubr.msk.f32.vlgmr.msra.gmra.mrb[14].mxu1 %vm2423_vm7, %v2724_v46 }
 0xc17   : > { %v2803_v11 = vpop.f32.mrb[14].mxu1 }
 0xc18   : > { %v2804_v12 = vadd.f32 %v2803_v11, %v2733_v52  ;;  %v3251_v13 = vpop.f32.mrb[15].mxu1 }
 0xc1a   : > { %2808 = vst.msk [vmem:[%s810_s7] sm:$0x1] %vm2807_vm9, %v2804_v12 }
 0xc1b   : > { %3458 = shalt.err (!%p3455_p3)
}
 0xc1c   : > { %s3459_s8 = scalar_lea.hbm %s4418_s29, 16  ;;  %s3463_s0 = scalar_lea.hbm %s4487_s27, 32 }
 0xc1d   : > { %p3460_p4 = scmp.ne.s32.totalorder %s4418_s29, %s3459_s8  ;;  %p3464_p9 = scmp.lt.u32.totalorder %s4418_s29, %s4487_s27 }
 0xc1e   : > { %p3465_p10 = scmp.lt.u32.totalorder %s3463_s0, %s3459_s8  ;;  %p3467_p12 = scmp.lt.u32.totalorder %s3459_s8, %s4418_s29 }
 0xc1f   : > { %p3461_p7 = pnand %p3460_p4, %p3698_p5 }
 0xc20   : > { %p3466_p11 = por %p3465_p10, %p3464_p9 }
 0xc21   : > { %p3462_p8 = pneg %p3461_p7 }
 0xc22   : > { %p3468_p13 = por %p3467_p12, %p3466_p11 }
 0xc24   : > { %p3469_p0 = pnand %p3468_p13, %p3462_p8 }
 0xc26   : > { %3472 = shalt.err (!%p3469_p0)
}
 0xc27   : > { %3396 = dma.vmem_to_hbm [thread:$0]  (%p3698_p5), %s4420_s6, 16, %s4418_s29, %s2810_s12  }
 0xc28 PF: > { %s4540_s3 = sld [smem:[#allocation9_spill]]  ;;  %p3402_p1 = scmp.ge.s32.totalorder %s3507_s30, 2 }
 0xc2a   : > { %p3399_p2 = pnand %p3402_p1, %p3702_p6 }
 0xc2e   : > { %s2834_s2 = sand.u32 1, %s4540_s3  }
 0xc2f   : > { %s2835_s5 = scalar_lea.sflag [#allocation7], %s2834_s2 }
 0xc30   : > { %3490 = dma.done.wait (!%p3399_p2), %s2835_s5, 16  }
 0xc31   : > { %3492 = vsyncadd (!%p3399_p2), %s2835_s5, 4294967280  ;;  %s4542_s30 = sld [smem:[#allocation11_spill]]  ;;  %s4543_s8 = sld [smem:[#allocation10_spill]] }
 0xc32   : > { %s4544_s0 = sld [smem:[#allocation12_spill]]  ;;  %s4545_s7 = smov %s3499_s4 }
 0xc37   : > { %p37_p3 = scmp.ge.s32.totalorder %s4542_s30, 4   ;;  %s4546_s4 = smov %s4543_s8 }
 0xc38   : > { %s4547_s8 = smov %s4544_s0 }
 0xc39   :  { %39 = sbr.rel (!%p37_p3) target bundleno = 17 (0x11), region = 175 }
 0xc40   :  { %2839 = vsyncpa [#allocation7], 1 }
 0xc41   :  { %2841 = vsyncpa [#allocation7 + $0x1], 1 }

</bundles_post_ra>
